<compile_context>
chip_gen: v7x
topology: tpu7x:2x2x1
jax: 0.10.0
libtpu: 0.0.40
codegen_flags: <defaults>
</compile_context>

<pallas_src>
import functools
import math

import jax
import jax.numpy as jnp
import numpy as np
from jax import lax
from jax.experimental import pallas as pl
from jax.experimental.pallas import tpu as pltpu


_LANES = 128
_SUBLANES = 8


def _round_up(x, m):
    return (x + m - 1) // m * m


def _effective_groups(in_channels, groups):
    # Mirrors the PyTorch module: fall back to groups=1 if it does not divide C_in.
    return groups if in_channels % groups == 0 else 1


def _vmem_capacity_bytes():
    """Per-core VMEM capacity; conservative (v7x-sized) fallback if unknown."""
    try:
        cap = getattr(pltpu.get_tpu_info(), "vmem_capacity_bytes", None)
        if cap:
            return int(cap)
    except Exception:
        pass
    return 64 * 1024 * 1024


_SUBLANE_ROLL_OK = None


def _sublane_roll_supported():
    """Probe: bf16 sublane rotate via pltpu.roll, with jnp.roll semantics."""
    global _SUBLANE_ROLL_OK
    if _SUBLANE_ROLL_OK is None:
        def _k(x_ref, o_ref):
            o_ref[...] = pltpu.roll(x_ref[...], 23, axis=1)
        try:
            xp = jax.random.normal(jax.random.PRNGKey(1), (8, 24, 128),
                                   dtype=jnp.float32).astype(jnp.bfloat16)
            got = pl.pallas_call(
                _k, out_shape=jax.ShapeDtypeStruct((8, 24, 128), jnp.bfloat16))(xp)
            want = jnp.roll(xp, 23, axis=1)
            _SUBLANE_ROLL_OK = bool(np.array_equal(np.asarray(got), np.asarray(want)))
        except Exception:
            _SUBLANE_ROLL_OK = False
    return _SUBLANE_ROLL_OK


def _estimate_conv_vmem(TH, K, W_pa, W_out_p, Cin_p, Cout_p, out_bytes):
    """Honest per-step VMEM estimate: double-buffered blocks + kernel temps."""
    th_in = TH + K - 1
    x_blk = TH * W_pa * Cin_p * 2                       # bf16 main strip
    halo_blk = max(K - 1, 0) * W_pa * Cin_p * 2         # bf16 halo rows
    w_blk = K * K * Cin_p * Cout_p * 2                  # bf16 folded weight
    o_blk = TH * W_out_p * Cout_p * out_bytes
    tmp = th_in * W_pa * Cin_p * 2                      # main + halo concat
    tmp += th_in * W_out_p * K * Cin_p * 2              # kx-folded im2col slab
    tmp += 2 * TH * W_out_p * Cout_p * 4                # f32 accumulator (+ square)
    return 2 * (x_blk + halo_blk + o_blk) + 2 * w_blk + tmp


def _pick_row_tile(H_out, K, W_pa, W_out_p, Cin_p, Cout_p, out_bytes, budget_bytes):
    step = max(K - 1, 1)          # halo blocks are (K-1) rows -> TH must be a multiple
    th_cap = min(_round_up(H_out, step), 256)
    best = step
    th = step
    while th <= th_cap:
        if _estimate_conv_vmem(th, K, W_pa, W_out_p, Cin_p, Cout_p, out_bytes) <= budget_bytes:
            best = th
        th += step
    return best


# ---------------------------------------------------------------------------
# Kernel 1: grouped conv over one (batch, row-strip) tile, optionally emitting
# masked per-strip GroupNorm partial sums.
# ---------------------------------------------------------------------------
def _group_conv_kernel(*refs, K, TH, W_out, W_out_p, H_out, Cin_p, Cout_p,
                       with_halo, with_stats, use_roll):
    if with_stats:
        *in_refs, o_ref, s_ref = refs
    else:
        *in_refs, o_ref = refs
        s_ref = None
    if with_halo:
        x_ref, halo_ref, w_ref, b_ref = in_refs
    else:
        x_ref, w_ref, b_ref = in_refs
        halo_ref = None

    # Assemble the (TH + K - 1)-row strip; halo rows come from their own
    # BlockSpec so the main strips are non-overlapping in HBM.
    x = x_ref[0]                                             # (TH, W_pa, Cin_p) bf16
    if with_halo:
        x = jnp.concatenate([x, halo_ref[0]], axis=0)        # (TH+K-1, W_pa, Cin_p)
    th_in, w_pa = x.shape[0], x.shape[1]

    # Fold the kx taps into the contraction dim.  Column shifts go through the
    # XLU (pltpu.roll) followed by an offset-0, 8-aligned slice; if roll is not
    # available, fall back to a plain (relayout) slice.
    cols = []
    for kx in range(K):
        if kx == 0:
            win = x[:, :W_out_p, :]
        elif use_roll:
            win = pltpu.roll(x, w_pa - kx, axis=1)[:, :W_out_p, :]
        else:
            win = x[:, kx:kx + W_out_p, :]
        cols.append(win)
    xcat = cols[0] if K == 1 else jnp.concatenate(cols, axis=-1)  # (th_in, W_out_p, K*Cin_p)

    M = TH * W_out_p
    acc = None
    for ky in range(K):
        win = xcat[ky:ky + TH].reshape(M, K * Cin_p)
        d = jnp.dot(win, w_ref[ky], preferred_element_type=jnp.float32)
        acc = d if acc is None else acc + d
    acc = acc + b_ref[...]                                   # (1, Cout_p) broadcast add

    o_ref[0] = acc.reshape(TH, W_out_p, Cout_p).astype(o_ref.dtype)

    if with_stats:
        # Per-strip sum / sum-of-squares over *valid* pixels only, so the
        # GroupNorm statistics can be finished cheaply in the wrapper.
        need_col_mask = W_out_p != W_out
        need_row_mask = (H_out % TH) != 0
        if need_col_mask or need_row_mask:
            m_ids = lax.broadcasted_iota(jnp.int32, (1, M), 1)
            row = m_ids // W_out_p
            col = m_ids - row * W_out_p
            valid = (col < W_out) if need_col_mask else (col >= 0)
            if need_row_mask:
                valid = valid & ((row + pl.program_id(1) * TH) < H_out)
            maskf = valid.astype(jnp.float32)                # (1, M)
            s1 = jnp.dot(maskf, acc, preferred_element_type=jnp.float32)
            s2 = jnp.dot(maskf, acc * acc, preferred_element_type=jnp.float32)
        else:
            s1 = jnp.sum(acc, axis=0, keepdims=True)
            s2 = jnp.sum(acc * acc, axis=0, keepdims=True)
        s_ref[0, 0] = jnp.concatenate([s1, s2], axis=0)      # (2, Cout_p)


# ---------------------------------------------------------------------------
# Kernel 2: row-tiled per-channel affine (folded GroupNorm) + LeakyReLU(0.2).
# ---------------------------------------------------------------------------
def _norm_lrelu_kernel(y_ref, sc_ref, sh_ref, o_ref, *, slope):
    y = y_ref[0].astype(jnp.float32)                         # (TH, W_out_p, Cout_p)
    z = y * sc_ref[0] + sh_ref[0]                            # (1, Cout_p) broadcasts
    o_ref[0] = jnp.where(z >= 0.0, z, slope * z).astype(o_ref.dtype)


# ---------------------------------------------------------------------------
# Wrapper
# ---------------------------------------------------------------------------
def group_conv2d(x_nchw, params, *, kernel_size, stride, padding, groups,
                 act_norm=False, row_tile=None):
    """Pallas forward of GroupConv2d.  x: (B, C_in, H, W) f32 -> (B, C_out, H_out, W_out)."""
    if stride != 1:
        # TODO(synk): only stride=1 (the common GroupConv2d configuration) is
        # implemented; general stride needs strided tap windows.
        raise NotImplementedError("group_conv2d: only stride=1 is implemented")

    conv_w = params["conv_w"]                  # (C_out, C_in//G, K, K)
    conv_b = params["conv_b"]                  # (C_out,)
    B, C_in, H, W = x_nchw.shape
    C_out = conv_w.shape[0]
    K = kernel_size
    G = _effective_groups(C_in, groups)
    if C_out % G != 0:
        raise ValueError("out_channels must be divisible by groups (as in nn.Conv2d)")

    H_out = H + 2 * padding - K + 1
    W_out = W + 2 * padding - K + 1
    Cin_p = _round_up(C_in, _LANES)
    Cout_p = _round_up(C_out, _LANES)
    W_out_p = _round_up(W_out, _SUBLANES)
    W_pa = _round_up(max(W + 2 * padding, W_out_p + K - 1), _SUBLANES)

    vmem_cap = _vmem_capacity_bytes()
    vmem_limit = min(int(vmem_cap * 0.75), 96 * 1024 * 1024)
    out_bytes = 2 if act_norm else 4           # bf16 intermediate when GN follows

    TH = row_tile if row_tile is not None else _pick_row_tile(
        H_out, K, W_pa, W_out_p, Cin_p, Cout_p, out_bytes,
        budget_bytes=vmem_limit // 2)
    step = max(K - 1, 1)
    if TH % step:
        raise ValueError("row_tile must be a multiple of kernel_size - 1")
    n_h = (H_out + TH - 1) // TH
    H_out_pad = n_h * TH
    H_tot = (n_h + 1) * TH if K > 1 else n_h * TH
    use_roll = K > 1 and _sublane_roll_supported()

    # ---- host-side layout prep: NCHW -> NHWC bf16, zero-pad to aligned dims ----
    x_nhwc = jnp.transpose(x_nchw, (0, 2, 3, 1)).astype(jnp.bfloat16)
    x_pad = jnp.pad(x_nhwc, ((0, 0),
                             (padding, H_tot - H - padding),
                             (padding, W_pa - W - padding),
                             (0, Cin_p - C_in)))

    # Grouped conv as a block-diagonal dense weight, folded over kx:
    # (K, K, Cin_p, Cout_p) -> (K, K*Cin_p, Cout_p).
    cin_g = C_in // G
    cout_g = C_out // G
    # TODO(synk): for cin_g >= 128 a per-group grid axis would avoid the G^2/G
    # block-diagonal MXU waste; dense is used because cin_g < 128 in the common
    # GroupConv2d configurations.
    w_hwio = jnp.transpose(conv_w, (2, 3, 1, 0)).astype(jnp.float32)  # (K,K,cin_g,C_out)
    w_dense = jnp.zeros((K, K, Cin_p, Cout_p), jnp.float32)
    for g in range(G):
        w_dense = w_dense.at[:, :,
                             g * cin_g:(g + 1) * cin_g,
                             g * cout_g:(g + 1) * cout_g].set(
            w_hwio[:, :, :, g * cout_g:(g + 1) * cout_g])
    w_fold = w_dense.reshape(K, K * Cin_p, Cout_p).astype(jnp.bfloat16)
    b_pad = jnp.zeros((1, Cout_p), jnp.float32).at[0, :C_out].set(conv_b)

    conv_kernel = functools.partial(
        _group_conv_kernel, K=K, TH=TH, W_out=W_out, W_out_p=W_out_p,
        H_out=H_out, Cin_p=Cin_p, Cout_p=Cout_p,
        with_halo=K > 1, with_stats=act_norm, use_roll=use_roll)

    in_arrays = [x_pad]
    in_specs = [pl.BlockSpec((1, TH, W_pa, Cin_p), lambda b, i: (b, i, 0, 0))]
    if K > 1:
        hbps = TH // (K - 1)     # halo blocks per strip (block rows = K-1)
        in_arrays.append(x_pad)
        in_specs.append(pl.BlockSpec((1, K - 1, W_pa, Cin_p),
                                     lambda b, i: (b, (i + 1) * hbps, 0, 0)))
    in_arrays += [w_fold, b_pad]
    in_specs += [pl.BlockSpec((K, K * Cin_p, Cout_p), lambda b, i: (0, 0, 0)),
                 pl.BlockSpec((1, Cout_p), lambda b, i: (0, 0))]

    y_dtype = jnp.bfloat16 if act_norm else jnp.float32
    y_shape = jax.ShapeDtypeStruct((B, H_out_pad, W_out_p, Cout_p), y_dtype)
    y_spec = pl.BlockSpec((1, TH, W_out_p, Cout_p), lambda b, i: (b, i, 0, 0))
    if act_norm:
        out_shape = (y_shape,
                     jax.ShapeDtypeStruct((B, n_h, 2, Cout_p), jnp.float32))
        out_specs = (y_spec,
                     pl.BlockSpec((1, 1, 2, Cout_p), lambda b, i: (b, i, 0, 0)))
    else:
        out_shape = y_shape
        out_specs = y_spec

    conv_out = pl.pallas_call(
        conv_kernel,
        out_shape=out_shape,
        grid_spec=pltpu.PrefetchScalarGridSpec(
            num_scalar_prefetch=0,
            grid=(B, n_h),
            in_specs=in_specs,
            out_specs=out_specs),
        compiler_params=pltpu.CompilerParams(
            dimension_semantics=("parallel", "parallel"),
            vmem_limit_bytes=vmem_limit),
    )(*in_arrays)

    if not act_norm:
        y = conv_out
        return jnp.transpose(y[:, :H_out, :W_out, :C_out], (0, 3, 1, 2))

    y, stats = conv_out

    # ---- finish GroupNorm statistics on the tiny per-strip sums ----
    eps = 1e-5
    Cg = C_out // G
    n_elem = float(H_out * W_out * Cg)
    s1 = jnp.sum(stats[:, :, 0, :C_out], axis=1).reshape(B, G, Cg).sum(-1)  # (B, G)
    s2 = jnp.sum(stats[:, :, 1, :C_out], axis=1).reshape(B, G, Cg).sum(-1)
    mean = s1 / n_elem
    # TODO(synk): E[x^2]-E[x]^2 in f32 can cancel for large-mean activations; a
    # shifted two-pass variance would be safer for production.
    var = jnp.maximum(s2 / n_elem - mean * mean, 0.0)
    inv = lax.rsqrt(var + eps)                                    # (B, G)
    inv_c = jnp.repeat(inv, Cg, axis=1)                           # (B, C_out)
    mean_c = jnp.repeat(mean, Cg, axis=1)
    scale = params["gn_w"][None, :] * inv_c
    shift = params["gn_b"][None, :] - mean_c * scale
    scale_p = jnp.zeros((B, 1, Cout_p), jnp.float32).at[:, 0, :C_out].set(scale)
    shift_p = jnp.zeros((B, 1, Cout_p), jnp.float32).at[:, 0, :C_out].set(shift)

    y_out = pl.pallas_call(
        functools.partial(_norm_lrelu_kernel, slope=0.2),
        out_shape=jax.ShapeDtypeStruct((B, H_out_pad, W_out_p, Cout_p), jnp.float32),
        grid_spec=pltpu.PrefetchScalarGridSpec(
            num_scalar_prefetch=0,
            grid=(B, n_h),
            in_specs=[
                pl.BlockSpec((1, TH, W_out_p, Cout_p), lambda b, i: (b, i, 0, 0)),
                pl.BlockSpec((1, 1, Cout_p), lambda b, i: (b, 0, 0)),
                pl.BlockSpec((1, 1, Cout_p), lambda b, i: (b, 0, 0)),
            ],
            out_specs=pl.BlockSpec((1, TH, W_out_p, Cout_p),
                                   lambda b, i: (b, i, 0, 0))),
        compiler_params=pltpu.CompilerParams(
            dimension_semantics=("parallel", "parallel"),
            vmem_limit_bytes=vmem_limit),
    )(y, scale_p, shift_p)

    # Drop channel/spatial padding, return to NCHW (PyTorch layout).
    return jnp.transpose(y_out[:, :H_out, :W_out, :C_out], (0, 3, 1, 2))


# ---------------------------------------------------------------------------
# Pure-JAX reference (independent path: lax.conv_general_dilated + GroupNorm).
# ---------------------------------------------------------------------------
def group_conv2d_reference(x_nchw, params, *, kernel_size, stride, padding,
                           groups, act_norm):
    conv_w = params["conv_w"]
    conv_b = params["conv_b"]
    B, C_in, H, W = x_nchw.shape
    C_out = conv_w.shape[0]
    G = _effective_groups(C_in, groups)

    x = jnp.transpose(x_nchw, (0, 2, 3, 1)).astype(jnp.bfloat16)      # NHWC
    w = jnp.transpose(conv_w, (2, 3, 1, 0)).astype(jnp.bfloat16)      # HWIO
    y = lax.conv_general_dilated(
        x, w, window_strides=(stride, stride),
        padding=((padding, padding), (padding, padding)),
        dimension_numbers=("NHWC", "HWIO", "NHWC"),
        feature_group_count=G,
        preferred_element_type=jnp.float32)
    y = y + conv_b.reshape(1, 1, 1, -1)

    if act_norm:
        Cg = C_out // G
        Ho, Wo = y.shape[1], y.shape[2]
        yg = y.reshape(B, Ho, Wo, G, Cg)
        mean = jnp.mean(yg, axis=(1, 2, 4), keepdims=True)
        var = jnp.mean(jnp.square(yg - mean), axis=(1, 2, 4), keepdims=True)
        yn = ((yg - mean) / jnp.sqrt(var + 1e-5)).reshape(B, Ho, Wo, C_out)
        yn = yn * params["gn_w"].reshape(1, 1, 1, -1) + params["gn_b"].reshape(1, 1, 1, -1)
        y = jnp.where(yn >= 0, yn, 0.2 * yn)
    return jnp.transpose(y, (0, 3, 1, 2))


def init_params(key, in_channels, out_channels, kernel_size, groups):
    """Random parameters in PyTorch Conv2d / GroupNorm layout."""
    g = _effective_groups(in_channels, groups)
    k1, k2, k3, k4 = jax.random.split(key, 4)
    fan_in = (in_channels // g) * kernel_size * kernel_size
    bound = 1.0 / math.sqrt(fan_in)
    conv_w = jax.random.uniform(k1, (out_channels, in_channels // g,
                                     kernel_size, kernel_size),
                                jnp.float32, -bound, bound)
    conv_b = jax.random.uniform(k2, (out_channels,), jnp.float32, -bound, bound)
    gn_w = 1.0 + 0.1 * jax.random.normal(k3, (out_channels,), jnp.float32)
    gn_b = 0.1 * jax.random.normal(k4, (out_channels,), jnp.float32)
    return {"conv_w": conv_w, "conv_b": conv_b, "gn_w": gn_w, "gn_b": gn_b}


if __name__ == "__main__":
    key = jax.random.PRNGKey(0)
    k_x, k_p = jax.random.split(key)

    B, C_in, H, W = 2, 8, 16, 16
    C_out, K, groups = 16, 3, 4
    stride, padding = 1, 1

    x = jax.random.normal(k_x, (B, C_in, H, W), dtype=jnp.float32)
    params = init_params(k_p, C_in, C_out, K, groups)
    common = dict(kernel_size=K, stride=stride, padding=padding, groups=groups)

    # conv -> GroupNorm -> LeakyReLU   (act_norm=True path)
    y = jax.block_until_ready(group_conv2d(x, params, act_norm=True, **common))
    y_ref = jax.block_until_ready(
        group_conv2d_reference(x, params, act_norm=True, **common))
    # The conv -> GN intermediate is stored in bf16 (HBM-traffic optimisation),
    # hence the 1e-2 tolerance against the f32-intermediate reference.
    np.testing.assert_allclose(np.asarray(y), np.asarray(y_ref),
                               rtol=1e-2, atol=1e-2)

    # plain grouped conv               (act_norm=False path)
    y2 = jax.block_until_ready(group_conv2d(x, params, act_norm=False, **common))
    y2_ref = jax.block_until_ready(
        group_conv2d_reference(x, params, act_norm=False, **common))
    np.testing.assert_allclose(np.asarray(y2), np.asarray(y2_ref),
                               rtol=2e-3, atol=2e-3)

    print("KERNEL_OK")
</pallas_src>

<mosaic_0001>
module attributes {stable_mosaic.version = 11 : i64} {
  func.func @_k(%arg0: memref<8x24x128xbf16, #tpu.memory_space<vmem>>, %arg1: memref<8x24x128xbf16, #tpu.memory_space<vmem>>) attributes {dimension_semantics = [], scalar_prefetch = 0 : i64, scratch_operands = 0 : i64, tpu.core_type = #tpu.core_type<tc>} {
    %c0 = arith.constant 0 : index
    %c0_0 = arith.constant 0 : index
    %c0_1 = arith.constant 0 : index
    %0 = vector.load %arg0[%c0, %c0_0, %c0_1] : memref<8x24x128xbf16, #tpu.memory_space<vmem>>, vector<8x24x128xbf16>
    %c23_i32 = arith.constant 23 : i32
    %1 = tpu.dynamic_rotate %0 by %c23_i32 dim 1 : vector<8x24x128xbf16>, i32 -> vector<8x24x128xbf16>
    %c0_2 = arith.constant 0 : index
    %c0_3 = arith.constant 0 : index
    %c0_4 = arith.constant 0 : index
    %2 = vector.load %arg1[%c0_2, %c0_3, %c0_4] : memref<8x24x128xbf16, #tpu.memory_space<vmem>>, vector<8x24x128xbf16>
    tpu.vector_store %arg1[%c0_2, %c0_3, %c0_4], %1 {strides = array<i32>} : memref<8x24x128xbf16, #tpu.memory_space<vmem>>, vector<8x24x128xbf16>,
    return
  }
}

module attributes {stable_mosaic.version = 11 : i64} {
  func.func @_group_conv_kernel(%arg0: i32, %arg1: i32, %arg2: memref<1x16x24x128xbf16, #tpu.memory_space<vmem>>, %arg3: memref<1x2x24x128xbf16, #tpu.memory_space<vmem>>, %arg4: memref<3x384x128xbf16, #tpu.memory_space<vmem>>, %arg5: memref<1x128xf32, #tpu.memory_space<vmem>>, %arg6: memref<1x16x16x128xbf16, #tpu.memory_space<vmem>>, %arg7: memref<1x1x2x128xf32, #tpu.memory_space<vmem>>) attributes {dimension_semantics = [#tpu.dimension_semantics<parallel>, #tpu.dimension_semantics<parallel>], iteration_bounds = array<i64: 2, 1>, scalar_prefetch = 0 : i64, scratch_operands = 0 : i64, tpu.core_type = #tpu.core_type<tc>, window_params = [{transform_indices = @transform_0, window_bounds = array<i64: 1, 16, 24, 128>}, {transform_indices = @transform_1, window_bounds = array<i64: 1, 2, 24, 128>}, {pipeline_mode = #tpu.pipeline_mode<synchronous>, transform_indices = @transform_2, window_bounds = array<i64: 3, 384, 128>}, {pipeline_mode = #tpu.pipeline_mode<synchronous>, transform_indices = @transform_3, window_bounds = array<i64: 1, 128>}, {transform_indices = @transform_4, window_bounds = array<i64: 1, 16, 16, 128>}, {transform_indices = @transform_5, window_bounds = array<i64: 1, 1, 2, 128>}]} {
    %c0 = arith.constant 0 : index
    %c0_0 = arith.constant 0 : index
    %c0_1 = arith.constant 0 : index
    %c0_2 = arith.constant 0 : index
    %0 = vector.load %arg2[%c0, %c0_0, %c0_1, %c0_2] : memref<1x16x24x128xbf16, #tpu.memory_space<vmem>>, vector<1x16x24x128xbf16>
    %1 = vector.shape_cast %0 : vector<1x16x24x128xbf16> to vector<16x24x128xbf16>
    %c0_3 = arith.constant 0 : index
    %c0_4 = arith.constant 0 : index
    %c0_5 = arith.constant 0 : index
    %c0_6 = arith.constant 0 : index
    %2 = vector.load %arg3[%c0_3, %c0_4, %c0_5, %c0_6] : memref<1x2x24x128xbf16, #tpu.memory_space<vmem>>, vector<1x2x24x128xbf16>
    %3 = vector.shape_cast %2 : vector<1x2x24x128xbf16> to vector<2x24x128xbf16>
    %4 = tpu.concatenate %1, %3 in 0 : vector<16x24x128xbf16>, vector<2x24x128xbf16> -> vector<18x24x128xbf16>
    %5 = vector.extract_strided_slice %4 {offsets = [0, 0, 0], sizes = [18, 16, 128], strides = [1, 1, 1]} : vector<18x24x128xbf16> to vector<18x16x128xbf16>
    %6 = vector.extract_strided_slice %4 {offsets = [0, 1, 0], sizes = [18, 16, 128], strides = [1, 1, 1]} : vector<18x24x128xbf16> to vector<18x16x128xbf16>
    %7 = vector.extract_strided_slice %4 {offsets = [0, 2, 0], sizes = [18, 16, 128], strides = [1, 1, 1]} : vector<18x24x128xbf16> to vector<18x16x128xbf16>
    %8 = tpu.concatenate %5, %6, %7 in 2 : vector<18x16x128xbf16>, vector<18x16x128xbf16>, vector<18x16x128xbf16> -> vector<18x16x384xbf16>
    %9 = vector.extract_strided_slice %8 {offsets = [0, 0, 0], sizes = [16, 16, 384], strides = [1, 1, 1]} : vector<18x16x384xbf16> to vector<16x16x384xbf16>
    %10 = vector.shape_cast %9 : vector<16x16x384xbf16> to vector<256x384xbf16>
    %c0_7 = arith.constant 0 : index
    %c0_8 = arith.constant 0 : index
    %c0_9 = arith.constant 0 : index
    %11 = vector.load %arg4[%c0_7, %c0_8, %c0_9] : memref<3x384x128xbf16, #tpu.memory_space<vmem>>, vector<1x384x128xbf16>
    %12 = vector.shape_cast %11 : vector<1x384x128xbf16> to vector<384x128xbf16>
    %cst = arith.constant dense<0.000000e+00> : vector<256x128xf32>
    %13 = tpu.matmul %10, %12, %cst {dimension_numbers = #tpu.dot_dimension_numbers<[1], [0], [0], [1], [0, 0, 1, 1], [], []>} : vector<256x384xbf16>, vector<384x128xbf16>, vector<256x128xf32> -> vector<256x128xf32>
    %14 = vector.extract_strided_slice %8 {offsets = [1, 0, 0], sizes = [16, 16, 384], strides = [1, 1, 1]} : vector<18x16x384xbf16> to vector<16x16x384xbf16>
    %15 = vector.shape_cast %14 : vector<16x16x384xbf16> to vector<256x384xbf16>
    %c1 = arith.constant 1 : index
    %c0_10 = arith.constant 0 : index
    %c0_11 = arith.constant 0 : index
    %16 = vector.load %arg4[%c1, %c0_10, %c0_11] : memref<3x384x128xbf16, #tpu.memory_space<vmem>>, vector<1x384x128xbf16>
    %17 = vector.shape_cast %16 : vector<1x384x128xbf16> to vector<384x128xbf16>
    %cst_12 = arith.constant dense<0.000000e+00> : vector<256x128xf32>
    %18 = tpu.matmul %15, %17, %cst_12 {dimension_numbers = #tpu.dot_dimension_numbers<[1], [0], [0], [1], [0, 0, 1, 1], [], []>} : vector<256x384xbf16>, vector<384x128xbf16>, vector<256x128xf32> -> vector<256x128xf32>
    %19 = arith.addf %13, %18 : vector<256x128xf32>
    %20 = vector.extract_strided_slice %8 {offsets = [2, 0, 0], sizes = [16, 16, 384], strides = [1, 1, 1]} : vector<18x16x384xbf16> to vector<16x16x384xbf16>
    %21 = vector.shape_cast %20 : vector<16x16x384xbf16> to vector<256x384xbf16>
    %c2 = arith.constant 2 : index
    %c0_13 = arith.constant 0 : index
    %c0_14 = arith.constant 0 : index
    %22 = vector.load %arg4[%c2, %c0_13, %c0_14] : memref<3x384x128xbf16, #tpu.memory_space<vmem>>, vector<1x384x128xbf16>
    %23 = vector.shape_cast %22 : vector<1x384x128xbf16> to vector<384x128xbf16>
    %cst_15 = arith.constant dense<0.000000e+00> : vector<256x128xf32>
    %24 = tpu.matmul %21, %23, %cst_15 {dimension_numbers = #tpu.dot_dimension_numbers<[1], [0], [0], [1], [0, 0, 1, 1], [], []>} : vector<256x384xbf16>, vector<384x128xbf16>, vector<256x128xf32> -> vector<256x128xf32>
    %25 = arith.addf %19, %24 : vector<256x128xf32>
    %c0_16 = arith.constant 0 : index
    %c0_17 = arith.constant 0 : index
    %26 = vector.load %arg5[%c0_16, %c0_17] : memref<1x128xf32, #tpu.memory_space<vmem>>, vector<1x128xf32>
    %27 = vector.broadcast %26 : vector<1x128xf32> to vector<256x128xf32>
    %28 = arith.addf %25, %27 : vector<256x128xf32>
    %29 = vector.shape_cast %28 : vector<256x128xf32> to vector<16x16x128xf32>
    %30 = arith.truncf %29 : vector<16x16x128xf32> to vector<16x16x128xbf16>
    %c0_18 = arith.constant 0 : index
    %c0_19 = arith.constant 0 : index
    %c0_20 = arith.constant 0 : index
    %c0_21 = arith.constant 0 : index
    %31 = vector.load %arg6[%c0_18, %c0_19, %c0_20, %c0_21] : memref<1x16x16x128xbf16, #tpu.memory_space<vmem>>, vector<1x16x16x128xbf16>
    %32 = vector.shape_cast %31 : vector<1x16x16x128xbf16> to vector<16x16x128xbf16>
    %33 = vector.shape_cast %30 : vector<16x16x128xbf16> to vector<1x16x16x128xbf16>
    tpu.vector_store %arg6[%c0_18, %c0_19, %c0_20, %c0_21], %33 {strides = array<i32>} : memref<1x16x16x128xbf16, #tpu.memory_space<vmem>>, vector<1x16x16x128xbf16>,
    %cst_22 = arith.constant dense<0.000000e+00> : vector<128xf32>
    %34 = vector.multi_reduction <add>, %28, %cst_22 [0] : vector<256x128xf32> to vector<128xf32>
    %35 = vector.shape_cast %34 : vector<128xf32> to vector<1x128xf32>
    %36 = arith.mulf %28, %28 : vector<256x128xf32>
    %cst_23 = arith.constant dense<0.000000e+00> : vector<128xf32>
    %37 = vector.multi_reduction <add>, %36, %cst_23 [0] : vector<256x128xf32> to vector<128xf32>
    %38 = vector.shape_cast %37 : vector<128xf32> to vector<1x128xf32>
    %39 = tpu.concatenate %35, %38 in 0 : vector<1x128xf32>, vector<1x128xf32> -> vector<2x128xf32>
    %c0_24 = arith.constant 0 : index
    %c0_25 = arith.constant 0 : index
    %c0_26 = arith.constant 0 : index
    %c0_27 = arith.constant 0 : index
    %40 = vector.load %arg7[%c0_24, %c0_25, %c0_26, %c0_27] : memref<1x1x2x128xf32, #tpu.memory_space<vmem>>, vector<1x1x2x128xf32>
    %41 = vector.shape_cast %40 : vector<1x1x2x128xf32> to vector<2x128xf32>
    %42 = vector.shape_cast %39 : vector<2x128xf32> to vector<1x1x2x128xf32>
    tpu.vector_store %arg7[%c0_24, %c0_25, %c0_26, %c0_27], %42 {strides = array<i32>} : memref<1x1x2x128xf32, #tpu.memory_space<vmem>>, vector<1x1x2x128xf32>,
    return
  }
  func.func @transform_0(%arg0: i32, %arg1: i32) -> (i32, i32, i32, i32) {
    %c0_i32 = arith.constant 0 : i32
    %c0_i32_0 = arith.constant 0 : i32
    %c0_i32_1 = arith.constant 0 : i32
    return %arg0, %arg1, %c0_i32, %c0_i32_0 : i32, i32, i32, i32
  }
  func.func @transform_1(%arg0: i32, %arg1: i32) -> (i32, i32, i32, i32) {
    %c1_i32 = arith.constant 1 : i32
    %0 = arith.addi %arg1, %c1_i32 : i32
    %c8_i32 = arith.constant 8 : i32
    %1 = arith.muli %0, %c8_i32 : i32
    %c0_i32 = arith.constant 0 : i32
    %c0_i32_0 = arith.constant 0 : i32
    %c0_i32_1 = arith.constant 0 : i32
    return %arg0, %1, %c0_i32, %c0_i32_0 : i32, i32, i32, i32
  }
  func.func @transform_2(%arg0: i32, %arg1: i32) -> (i32, i32, i32) {
    %c0_i32 = arith.constant 0 : i32
    %c0_i32_0 = arith.constant 0 : i32
    %c0_i32_1 = arith.constant 0 : i32
    %c0_i32_2 = arith.constant 0 : i32
    return %c0_i32, %c0_i32_0, %c0_i32_1 : i32, i32, i32
  }
  func.func @transform_3(%arg0: i32, %arg1: i32) -> (i32, i32) {
    %c0_i32 = arith.constant 0 : i32
    %c0_i32_0 = arith.constant 0 : i32
    %c0_i32_1 = arith.constant 0 : i32
    return %c0_i32, %c0_i32_0 : i32, i32
  }
  func.func @transform_4(%arg0: i32, %arg1: i32) -> (i32, i32, i32, i32) {
    %c0_i32 = arith.constant 0 : i32
    %c0_i32_0 = arith.constant 0 : i32
    %c0_i32_1 = arith.constant 0 : i32
    return %arg0, %arg1, %c0_i32, %c0_i32_0 : i32, i32, i32, i32
  }
  func.func @transform_5(%arg0: i32, %arg1: i32) -> (i32, i32, i32, i32) {
    %c0_i32 = arith.constant 0 : i32
    %c0_i32_0 = arith.constant 0 : i32
    %c0_i32_1 = arith.constant 0 : i32
    return %arg0, %arg1, %c0_i32, %c0_i32_0 : i32, i32, i32, i32
  }
}

</mosaic_0001>

<bundles_post_ra>
// kernel: tpu_custom_call.1
= control target key start
LH: loop header
LB: loop body
LE: loop exit
PB: predicated region body
PF: predicated region fallthrough
CT: control target
= control target key end

     0   :  { %s5542_s0 = inlined_call_operand.hbm [shape: bf16[2,32,24,128], index: 0, kind: input, shape index: {}]   ;;  %s5543_s1 = inlined_call_operand.hbm [shape: bf16[2,32,24,128], index: 1, kind: input, shape index: {}]   ;;  %s5544_s2 = inlined_call_operand.hbm [shape: bf16[3,384,128], index: 2, kind: input, shape index: {}]   ;;  %s5545_s3 = inlined_call_operand.vmem [shape: f32[1,128], index: 3, kind: input, shape index: {}]   ;;  %s5546_s4 = inlined_call_operand.hbm [shape: bf16[2,16,16,128], index: 4, kind: output, shape index: {0}]   ;;  %s5547_s5 = inlined_call_operand.hbm [shape: f32[2,1,2,128], index: 5, kind: output, shape index: {1}]  }
   0x1   :  { %5559 = sst [smem:[#allocation21_spill]] %s5542_s0 }
   0x2   :  { %5560 = sst [smem:[#allocation22_spill]] %s5544_s2 }
   0x3   :  { %11 = vsyncpa [#allocation3], 0 }
   0x4   :  { %13 = vsyncpa [#allocation3 + $0x1], 0 }
   0x5   :  { %14 = vsyncpa [#allocation6], 0 }
   0x6   :  { %16 = vsyncpa [#allocation6 + $0x1], 0 }
   0x7   :  { %17 = vsyncpa [#allocation4], 0 }
   0x8   :  { %19 = vsyncpa [#allocation4 + $0x1], 0 }
   0x9   :  { %20 = vsyncpa [#allocation10], 0 }
   0xa   :  { %22 = vsyncpa [#allocation10 + $0x1], 0  ;;  %s4421_s18 = smov 0   ;;  %s4423_s19 = smov 0  }
   0xb   :  { %s4425_s20 = smov 0   ;;  %s4427_s21 = smov 0  }
   0xc   :  { %s4429_s22 = smov 0   ;;  %s4431_s23 = smov 0  }
   0xd LB: > { %5561 = sst [smem:[#allocation16_spill]] %s4368_s20  ;;  %s4452_s24 = sadd.s32 4294967295, %s4380_s23   ;;  %s4380_s23 = sphi %s4431_s23, %s28_s23   ;;  %s4376_s22 = sphi %s4429_s22, %s5593_s22   ;;  %s4372_s21 = sphi %s4427_s21, %s5592_s21   ;;  %s4368_s20 = sphi %s4425_s20, %s5588_s20   ;;  %s4364_s19 = sphi %s4423_s19, %s5591_s19   ;;  %s4360_s18 = sphi %s4421_s18, %s5590_s18  }
   0xe   : > { %s2947_s25 = sadd.s32 4294967294, %s4380_s23   ;;  %p62_p0 = scmp.ne.s32.totalorder %s4364_s19, %s4360_s18 }
   0xf   : > { %p5548_p1 = scmp.eq.s32.totalorder %s4452_s24, 0  ;;  %p168_p3 = scmp.eq.s32.totalorder %s2947_s25, 1 }
  0x10   : > { %p2948_p5 = scmp.ge.s32.totalorder %s4380_s23, 1  ;;  %p203_p7 = scmp.lt.s32.totalorder %s4380_s23, 3 }
  0x11   : > { %p4461_p4 = por %p5548_p1, %p62_p0  ;;  %p4466_p6 = por %p168_p3, %p62_p0 }
  0x12   : > { %p4471_p8 = pnand %p2948_p5, %p203_p7  ;;  %s4382_s29 = smov [#allocation7]  }
  0x13   : > { %s5562_s26 = scalar_select %p4461_p4, 1, 0 }
  0x14   : > { %s5563_s27 = scalar_select %p4466_p6, 1, 0 }
  0x15   : > { %s5565_s28 = scalar_select %p4471_p8, 1, 0 }
  0x16   : > { %5564 = sst [smem:[#allocation17_spill]] %s5563_s27  ;;  %s215_s30 = sshll.u32 %s4382_s29, 4  ;;  %s216_s30 = int_to_ptr.vmem [resolvable:$true] %s215_s30 }
  0x17   : > { %p3978_p9 = pneg %p4471_p8  ;;  %s40_s7 = sadd.s32 1, %s4376_s22 }
  0x18   : > { %s5567_s2 = sld [smem:[#allocation22_spill]] }
  0x19   : > { %p4480_p11 = pnand %p3978_p9, %p5548_p1 }
  0x1b   : > { %p4171_p13 = pneg %p4480_p11 }
  0x1e   : > { %s4169_s10 = scalar_lea.hbm %s5567_s2, 9216 }
  0x1f   : > { %p4170_p12 = scmp.ne.s32.totalorder %s5567_s2, %s4169_s10  ;;  %p4176_p5 = scmp.lt.u32.totalorder %s4169_s10, %s5567_s2 }
  0x21   : > { %p4172_p0 = pnand %p4171_p13, %p4170_p12 }
  0x23   : > { %p4173_p3 = pneg %p4172_p0 }
  0x25   : > { %p4178_p7 = pnand %p4176_p5, %p4173_p3 }
  0x27   : > { %4181 = shalt.err (!%p4178_p7)
}
  0x28   : > { %s4182_s15 = scalar_lea.vmem %s216_s30, 9216  ;;  %p4190_p2 = scmp.lt.s32.totalorder %s216_s30, %s216_s30 }
  0x29   : > { %p4183_p9 = scmp.ne.s32.totalorder %s216_s30, %s4182_s15  ;;  %p4191_p6 = scmp.lt.s32.totalorder %s4182_s15, %s4182_s15 }
  0x2b   : > { %p4185_p10 = pnand %p4183_p9, %p4171_p13  ;;  %p4192_p4 = por %p4191_p6, %p4190_p2 }
  0x2d   : > { %p4186_p1 = pneg %p4185_p10 }
  0x2f   : > { %p4193_p8 = pnand %p4192_p4, %p4186_p1 }
  0x31   : > { %4196 = shalt.err (!%p4193_p8)
}
  0x32   : > { %s5552_s16 = smov 64   ;;  %s5554_s17 = smov 4  }
  0x33   : > { %3981 = dma.hbm_to_vmem [thread:$0]  (!%p4480_p11), %s5567_s2, 9216, %s216_s30, [#allocation6], %s5552_s16, %s5552_s16, %s5554_s17  }
  0x34   : > { %p42_p1 = scmp.ge.s32.totalorder %s40_s7, 2  ;;  %s49_s8 = sadd.s32 1, %s4368_s20 }
  0x35   : > { %p56_p2 = scmp.ne.s32.totalorder %s4368_s20, %s4364_s19  ;;  %p57_p4 = scmp.eq.s32.totalorder %s4380_s23, 0 }
  0x36   : > { %s5595_s7 = smov (%p42_p1, %s40_s7), 0  ;;  %p5569_p8 = scmp.eq.s32.totalorder %s4452_s24, 1 }
  0x37   : > { %5568 = sst [smem:[#allocation18_spill]] %s5595_s7  ;;  %p58_p6 = por %p57_p4, %p56_p2 }
  0x38   : > { %p4512_p10 = por %p5569_p8, %p56_p2  ;;  %s44_s9 = ssub.s32 %s4376_s22, %s5595_s7 }
  0x39   : > { %p3997_p12 = scmp.lt.s32.totalorder %s4380_s23, 2  ;;  %p47_p13 = scmp.eq.s32.totalorder %s44_s9, 0 }
  0x3a   : > { %s4520_s10 = sand.u32 1, %s4368_s20   ;;  %s5551_s12 = smul.u32 6144, %s4376_s22 }
  0x3b   : > { %s3961_s30 = smul.u32 192, %s4520_s10  ;;  %p4527_p11 = pnand %p3997_p12, %p58_p6 }
  0x3c   : > { %s4524_s11 = scalar_select %p47_p13, %s4368_s20, %s49_s8  }
  0x3d   : > { %s236_s13 = scalar_lea.vmem [#allocation2], %s3961_s30  ;;  %s5573_s0 = sld [smem:[#allocation21_spill]] }
  0x3e   : > { %5571 = sst [smem:[#allocation19_spill]] %s4524_s11  ;;  %s246_s14 = sshll.u32 %s236_s13, 4  ;;  %s4538_s14 = int_to_ptr.vmem [resolvable:$true] %s246_s14 }
  0x3f   : > { %s233_s30 = scalar_lea.sflag [#allocation3], %s4520_s10  ;;  %p4199_p3 = pneg %p4527_p11 }
  0x43   : > { %s4536_s9 = scalar_lea.hbm %s5573_s0, %s5551_s12  ;;  %s4202_s12 = scalar_lea.hbm %s5573_s0, 12288 }
  0x44   : > { %s4197_s13 = scalar_lea.hbm %s4536_s9, 3072  ;;  %p4203_p9 = scmp.lt.u32.totalorder %s4536_s9, %s5573_s0 }
  0x45   : > { %p4198_p0 = scmp.ne.s32.totalorder %s4536_s9, %s4197_s13  ;;  %p4204_p1 = scmp.lt.u32.totalorder %s4202_s12, %s4197_s13 }
  0x46   : > { %p4206_p4 = scmp.lt.u32.totalorder %s4197_s13, %s4536_s9 }
  0x47   : > { %p4200_p5 = pnand %p4199_p3, %p4198_p0  ;;  %p4205_p2 = por %p4204_p1, %p4203_p9 }
  0x49   : > { %p4201_p7 = pneg %p4200_p5  ;;  %p4207_p6 = por %p4206_p4, %p4205_p2 }
  0x4b   : > { %p4208_p8 = pnand %p4207_p6, %p4201_p7 }
  0x4d   : > { %4211 = shalt.err (!%p4208_p8)
}
  0x4e   : > { %s4212_s8 = scalar_lea.vmem %s4538_s14, 3072  ;;  %s4385_s25 = smov [#allocation2]  }
  0x4f   : > { %p4213_p12 = scmp.ne.s32.totalorder %s4538_s14, %s4212_s8  ;;  %s4217_s29 = sshll.u32 %s4385_s25, 4  ;;  %s4218_s29 = int_to_ptr.vmem [resolvable:$false] %s4217_s29 }
  0x50   : > { %s4219_s16 = scalar_lea.vmem %s4218_s29, 6144  ;;  %p4220_p5 = scmp.lt.s32.totalorder %s4538_s14, %s4218_s29 }
  0x51   : > { %p4215_p13 = pnand %p4213_p12, %p4199_p3  ;;  %p4221_p9 = scmp.lt.s32.totalorder %s4219_s16, %s4212_s8 }
  0x53   : > { %p4216_p0 = pneg %p4215_p13  ;;  %p4222_p1 = por %p4221_p9, %p4220_p5 }
  0x55   : > { %p4223_p2 = pnand %p4222_p1, %p4216_p0 }
  0x57   : > { %4226 = shalt.err (!%p4223_p2)
}
  0x58   : > { %s5574_s17 = smov 4   ;;  %s5575_s12 = smov 64  }
  0x59   : > { %3985 = dma.hbm_to_vmem [thread:$0]  (!%p4527_p11), %s4536_s9, 3072, %s4538_s14, %s233_s30, %s5575_s12, %s5575_s12, %s5574_s17  }
  0x5a   : > { %s3963_s13 = smul.u32 24, %s4520_s10  ;;  %s5577_s11 = sand.u32 1, %s4380_s23  }
  0x5b   : > { %s5576_s25 = smul.u32 6144, %s4376_s22  ;;  %s4584_s20 = scalar_lea.sflag [#allocation6], %s5577_s11 }
  0x5c   : > { %s260_s2 = scalar_lea.vmem [#allocation5], %s3963_s13  ;;  %s4232_s9 = scalar_lea.hbm %s5543_s1, 12288 }
  0x5d   : > { %s2847_s16 = scalar_lea.hbm %s5543_s1, %s5576_s25  ;;  %s272_s7 = sshll.u32 %s260_s2, 4  ;;  %s4580_s7 = int_to_ptr.vmem [resolvable:$true] %s272_s7 }
  0x5e   : > { %s4578_s0 = scalar_lea.hbm %s2847_s16, 3072  ;;  %s4257_s27 = scalar_lea.hbm %s2847_s16, 3456 }
  0x5f   : > { %p4228_p7 = scmp.ne.s32.totalorder %s4578_s0, %s4257_s27  ;;  %p4233_p8 = scmp.lt.u32.totalorder %s4578_s0, %s5543_s1 }
  0x60   : > { %p4234_p12 = scmp.lt.u32.totalorder %s4232_s9, %s4257_s27  ;;  %p4236_p0 = scmp.lt.u32.totalorder %s4257_s27, %s4578_s0 }
  0x61   : > { %p4230_p4 = pnand %p4228_p7, %p4199_p3 }
  0x62   : > { %p4235_p13 = por %p4234_p12, %p4233_p8 }
  0x63   : > { %p4231_p6 = pneg %p4230_p4 }
  0x64   : > { %p4237_p5 = por %p4236_p0, %p4235_p13 }
  0x66   : > { %p4238_p9 = pnand %p4237_p5, %p4231_p6 }
  0x68   : > { %4241 = shalt.err (!%p4238_p9)
}
  0x69   : > { %s4242_s2 = scalar_lea.vmem %s4580_s7, 384  ;;  %s4386_s11 = smov [#allocation5]  }
  0x6a   : > { %p4243_p1 = scmp.ne.s32.totalorder %s4580_s7, %s4242_s2  ;;  %s4247_s13 = sshll.u32 %s4386_s11, 4  ;;  %s4248_s13 = int_to_ptr.vmem [resolvable:$false] %s4247_s13 }
  0x6b   : > { %s4249_s8 = scalar_lea.vmem %s4248_s13, 768  ;;  %p4250_p4 = scmp.lt.s32.totalorder %s4580_s7, %s4248_s13 }
  0x6c   : > { %p4245_p2 = pnand %p4243_p1, %p4199_p3  ;;  %p4251_p8 = scmp.lt.s32.totalorder %s4249_s8, %s4242_s2 }
  0x6e   : > { %p4246_p7 = pneg %p4245_p2  ;;  %p4252_p12 = por %p4251_p8, %p4250_p4 }
  0x70   : > { %p4253_p13 = pnand %p4252_p12, %p4246_p7 }
  0x72   : > { %4256 = shalt.err (!%p4253_p13)
}
  0x73   : > { %3988 = dma.hbm_to_vmem [thread:$0]  (!%p4527_p11), %s4578_s0, 384, %s4580_s7, %s4584_s20, %s5575_s12, %s5575_s12, %s5574_s17  }
  0x74   : > { %p5578_p3 = scmp.ne.s32.totalorder %s5565_s28, 0 }
  0x76   : > { %284 = sbr.rel (%p5578_p3) target bundleno = 717 (0x2cd), region = 36 }
  0x7d   : > { %s4615_s27 = sand.u32 1, %s4364_s19   ;;  %p5579_p6 = scmp.ne.s32.totalorder %s5562_s26, 0 }
  0x7e   : > { %s3964_s29 = smul.u32 192, %s4615_s27  ;;  %s287_s16 = scalar_lea.sflag [#allocation3], %s4615_s27 }
  0x80   : > { %s4619_s10 = scalar_lea.vmem [#allocation2], %s3964_s29 }
  0x81   : > { %4339 = dma.done.wait (%p5579_p6), %s287_s16, 3072  }
  0x82   : > { %4341 = vsyncadd (%p5579_p6), %s287_s16, 4294964224  ;;  %s295_s0 = sand.u32 1, %s4452_s24   ;;  %s3965_s20 = smul.u32 24, %s4615_s27 }
  0x83   : > { %s296_s28 = scalar_lea.sflag [#allocation6], %s295_s0 }
  0x84   : > { %s4627_s7 = scalar_lea.vmem [#allocation5], %s3965_s20 }
  0x85   : > { %4343 = dma.done.wait (%p5579_p6), %s296_s28, 384  }
  0x86   : > { %4345 = vsyncadd (%p5579_p6), %s296_s28, 4294966912  ;;  %p5580_p11 = scmp.eq.s32.totalorder %s4452_s24, 0 }
  0x88   : > { %4347 = dma.done.wait (%p5580_p11), [#allocation6], 9216   ;;  %p5581_p0 = pmov %p5580_p11 }
  0x89   : > { %v4053_v0 = vld [vmem:[#allocation7 + $0x100] sm:$0xff]   ;;  %v4056_v3 = vld [vmem:[#allocation7 + $0x108] sm:$0xff]   ;;  %v4059_v6 = vld [vmem:[#allocation7 + $0x110] sm:$0xff]   ;;  %vm562_vm0 = vsmask.f32 7424  ;;  %vm797_vm1 = vcmask 1046528  }
  0x8a   : > { %4349 = vsyncadd (%p5581_p0), [#allocation6], 4294958080  ;;  %v4637_v1 = vld [vmem:[#allocation7 + $0x140] sm:$0xff]   ;;  %3233 = vmatprep.subr.bf16.mxu0 %v4053_v0  ;;  %v4641_v4 = vld [vmem:[#allocation7 + $0x148] sm:$0xff]   ;;  %s2955_s15 = sshll.u32 %s4615_s27, 7  ;;  %s3137_s12 = sshll.u32 %s4372_s21, 11 }
  0x8b   : > { %v4055_v2 = vld [vmem:[#allocation7 + $0xc0] sm:$0xff]   ;;  %3785 = vmatprep.subr.bf16.mxu1 %v4637_v1  ;;  %v4058_v5 = vld [vmem:[#allocation7 + $0xc8] sm:$0xff]   ;;  %v4644_v7 = vld [vmem:[#allocation7 + $0x150] sm:$0xff]   ;;  %s5363_s17 = scalar_lea.vmem [#allocation8], %s2955_s15  ;;  %s5459_s25 = scalar_lea.hbm %s5546_s4, %s3137_s12 }
  0x8c   : > { %3234 = vmatpush3.bf16.msra.mxu0 %v4055_v2  ;;  %3793 = vmatpush3.bf16.msra.mxu1 %v4637_v1  ;;  %v4061_v8 = vld [vmem:[#allocation7 + $0xd0] sm:$0xff]   ;;  %v4062_v9 = vld [vmem:[#allocation7 + $0x118] sm:$0xff]   ;;  %v4065_v12 = vld [vmem:[#allocation7 + $0x120] sm:$0xff]   ;;  %s2776_s14 = sshll.u32 %s5363_s17, 4  ;;  %s2755_s2 = scalar_lea.sflag [#allocation4], %s4615_s27  ;;  %s5461_s14 = int_to_ptr.vmem [resolvable:$true] %s2776_s14 }
  0x8d   : > { %3235 = vmatprep.subr.bf16.mxu0 %v4056_v3  ;;  %3786 = vmatprep.subr.bf16.mxu1 %v4641_v4  ;;  %v4648_v10 = vld [vmem:[#allocation7 + $0x158] sm:$0xff]   ;;  %v4652_v13 = vld [vmem:[#allocation7 + $0x160] sm:$0xff]   ;;  %v4068_v15 = vld [vmem:[#allocation7 + $0x128] sm:$0xff]   ;;  %s4258_s11 = scalar_lea.vmem %s5461_s14, 2048  ;;  %s4387_s13 = smov [#allocation8]  }
  0x8e   : > { %v4064_v11 = vld [vmem:[#allocation7 + $0xd8] sm:$0xff]   ;;  %v4067_v14 = vld [vmem:[#allocation7 + $0xe0] sm:$0xff]   ;;  %v4656_v16 = vld [vmem:[#allocation7 + $0x168] sm:$0xff]   ;;  %p4259_p5 = scmp.ne.s32.totalorder %s5461_s14, %s4258_s11  ;;  %s4262_s8 = sshll.u32 %s4387_s13, 4  ;;  %s4263_s8 = int_to_ptr.vmem [resolvable:$false] %s4262_s8 }
  0x8f   : > { %v4070_v17 = vld [vmem:[#allocation7 + $0xe8] sm:$0xff]   ;;  %v4071_v18 = vld [vmem:[#allocation7 + $0x130] sm:$0xff]   ;;  %v4074_v21 = vld [vmem:[#allocation7 + $0x138] sm:$0xff]   ;;  %s4264_s29 = scalar_lea.vmem %s4263_s8, 4096  ;;  %p4265_p2 = scmp.lt.s32.totalorder %s5461_s14, %s4263_s8 }
  0x90   : > { %3236 = vmatpush3.bf16.msra.mxu0 %v4058_v5  ;;  %3794 = vmatpush3.bf16.msra.mxu1 %v4641_v4  ;;  %v4660_v19 = vld [vmem:[#allocation7 + $0x170] sm:$0xff]   ;;  %v4662_v22 = vld [vmem:[#allocation7 + $0x178] sm:$0xff]   ;;  %v4670_v24 = vld [vmem:[%s4619_s10 + $0x14] ss:$0 sps:$4 sm:$0xff]   ;;  %p4260_p9 = pnand %p4259_p5, %p4512_p10  ;;  %p4266_p7 = scmp.lt.s32.totalorder %s4264_s29, %s4258_s11 }
  0x91   : > { %3237 = vmatprep.subr.bf16.mxu0 %v4059_v6  ;;  %3787 = vmatprep.subr.bf16.mxu1 %v4644_v7  ;;  %v4073_v20 = vld [vmem:[#allocation7 + $0xf0] sm:$0xff]   ;;  %v4667_v23 = vld [vmem:[%s4619_s10 + $0xc] sm:$0xff]   ;;  %v583_v29 = vshll.u32 %v4670_v24, 16  ;;  %v4679_v30 = vld [vmem:[%s4619_s10 + $0x74] ss:$0 sps:$4 sm:$0xff]  }
  0x92   : > { %v4076_v25 = vld [vmem:[#allocation7 + $0xf8] sm:$0xff]   ;;  %v576_v27 = vshrl.u32 %v4667_v23, 16  ;;  %v578_v28 = vshll.u32 %v4667_v23, 16  ;;  %v4682_v31 = vld [vmem:[%s4619_s10 + $0x78] sm:$0xff]   ;;  %v4083_v33 = vld [vmem:[#allocation7 + $0x40] sm:$0xff]   ;;  %v826_v36 = vrot.slane %v4679_v30, 1  ;;  %p4261_p1 = pneg %p4260_p9  ;;  %p4267_p4 = por %p4266_p7, %p4265_p2 }
  0x93   : > { %v4673_v26 = vld [vmem:[%s4619_s10 + $0x6c] sm:$0xff]   ;;  %v585_v35 = vrot.slane %v583_v29, 1  ;;  %v828_v37 = vrot.slane %v4682_v31, 1  ;;  %v4690_v38 = vld [vmem:[%s4619_s10 + $0x80] ss:$0 sps:$4 sm:$0xff]   ;;  %v4085_v44 = vld [vmem:[#allocation7 + $0x48] sm:$0xff]  }
  0x94   : > { %3238 = vmatpush3.bf16.msra.mxu0 %v4061_v8  ;;  %3795 = vmatpush3.bf16.msra.mxu1 %v4644_v7  ;;  %v825_v32 = vrot.slane %v4673_v26, 1  ;;  %v580_v34 = vrot.slane %v578_v28, 1  ;;  %v829_v41 = vrot.slane %v4690_v38, 1  ;;  %v4084_v42 = vld [vmem:[#allocation7] sm:$0xff]   ;;  %v4086_v46 = vld [vmem:[#allocation7 + $0x8] sm:$0xff]   ;;  %v4716_v49 = vld [vmem:[%s4619_s10 + $0x84] sm:$0xff]   ;;  %p4268_p8 = pnand %p4267_p4, %p4261_p1 }
  0x95   : > { %3239 = vmatprep.subr.bf16.mxu0 %v4062_v9  ;;  %3788 = vmatprep.subr.bf16.mxu1 %v4648_v10  ;;  %v4709_v47 = vld [vmem:[%s4619_s10 + $0x18] sm:$0xff]   ;;  %v4712_v48 = vld [vmem:[%s4619_s10 + $0x20] ss:$0 sps:$4 sm:$0xff]   ;;  %v4722_v53 = vld [vmem:[%s4619_s10 + $0x8c] ss:$0 sps:$4 sm:$0xff]   ;;  %v831_v55 = vrot.slane %v4716_v49, 1 }
  0x96   : > { %v581_v39 = vor.u32 %v580_v34, %v576_v27  ;;  %v4693_v40 = vsel %vm797_vm1, %v825_v32, %v826_v36  ;;  %v4704_v45 = vsel %vm797_vm1, %v828_v37, %v829_v41  ;;  %v588_v50 = vshrl.u32 %v4709_v47, 16  ;;  %v4725_v54 = vld [vmem:[%s4619_s10 + $0x90] sm:$0xff]   ;;  %v4093_v56 = vld [vmem:[#allocation7 + $0x50] sm:$0xff]   ;;  %v4732_v61 = vld [vmem:[%s4619_s10 + $0x98] ss:$0 sps:$4 sm:$0xff]  }
  0x97   : > { %3673 = vmatprep.mubr.bf16.mxu1 %v4693_v40  ;;  %v590_v51 = vshll.u32 %v4709_v47, 16  ;;  %v595_v52 = vshll.u32 %v4712_v48, 16  ;;  %v832_v59 = vrot.slane %v4722_v53, 1  ;;  %v834_v60 = vrot.slane %v4725_v54, 1  ;;  %v4094_v0 = vld [vmem:[#allocation7 + $0x10] sm:$0xff]   ;;  %v4095_v2 = vld [vmem:[#allocation7 + $0x58] sm:$0xff]  }
  0x98   : > { %3240 = vmatpush3.bf16.msra.mxu0 %v4064_v11  ;;  %3796 = vmatpush3.bf16.msra.mxu1 %v4648_v10  ;;  %v4698_v43 = vsel %vm562_vm0, %v581_v39, %v585_v35  ;;  %v4751_v6 = vld [vmem:[%s4619_s10 + $0x24] sm:$0xff]   ;;  %v4754_v8 = vld [vmem:[%s4619_s10 + $0x2c] ss:$0 sps:$4 sm:$0xff]   ;;  %v4757_v9 = vld [vmem:[%s4619_s10 + $0x9c] sm:$0xff]  }
  0x99   : > { %3241 = vmatprep.subr.bf16.mxu0 %v4065_v12  ;;  %3789 = vmatprep.subr.bf16.mxu1 %v4652_v13  ;;  %v592_v57 = vrot.slane %v590_v51, 1  ;;  %v597_v58 = vrot.slane %v595_v52, 1  ;;  %v4736_v63 = vsel %vm797_vm1, %v831_v55, %v832_v59  ;;  %v600_v11 = vshrl.u32 %v4751_v6, 16  ;;  %v4774_v28 = vld [vmem:[%s4619_s10 + $0xb0] ss:$0 sps:$4 sm:$0xff]   ;;  %v4105_v35 = vld [vmem:[#allocation7 + $0x68] sm:$0xff]  }
  0x9a   : > { %1143 = vmatprep.mubr.bf16.mxu0 %v4698_v43  ;;  %v602_v12 = vshll.u32 %v4751_v6, 16  ;;  %v841_v34 = vrot.slane %v4774_v28, 1  ;;  %v4793_v39 = vld [vmem:[%s4619_s10 + $0x30] sm:$0xff]   ;;  %v4796_v41 = vld [vmem:[%s4619_s10 + $0x38] ss:$0 sps:$4 sm:$0xff]  }
  0x9b   : > { %v593_v62 = vor.u32 %v592_v57, %v588_v50  ;;  %v619_v50 = vshll.u32 %v4796_v41, 16  ;;  %v4806_v51 = vld [vmem:[%s4619_s10 + $0xbc] ss:$0 sps:$4 sm:$0xff]  }
  0x9c   : > { %3242 = vmatpush3.bf16.msra.mxu0 %v4067_v14  ;;  %3797 = vmatpush3.bf16.msra.mxu1 %v4652_v13  ;;  %v607_v14 = vshll.u32 %v4754_v8, 16  ;;  %v4809_v52 = vld [vmem:[%s4627_s7] sm:$0xff]  }
  0x9d   : > { %3243 = vmatprep.subr.bf16.mxu0 %v4068_v15  ;;  %3790 = vmatprep.subr.bf16.mxu1 %v4656_v16  ;;  %v4742_v3 = vsel %vm562_vm0, %v593_v62, %v597_v58  ;;  %v4764_v15 = vld [vmem:[%s4619_s10 + $0xa4] ss:$0 sps:$4 sm:$0xff]   ;;  %v621_v58 = vrot.slane %v619_v50, 1  ;;  %v846_v59 = vrot.slane %v4809_v52, 1  ;;  %v4858_v50 = vld [vmem:[%s4619_s10 + $0x54] sm:$0xff]  }
  0xa0   : > { %3244 = vmatpush3.bf16.msra.mxu0 %v4070_v17  ;;  %3798 = vmatpush3.bf16.msra.mxu1 %v4656_v16  ;;  %v4767_v17 = vld [vmem:[%s4619_s10 + $0xa8] sm:$0xff]  }
  0xa1   : > { %3245 = vmatprep.subr.bf16.mxu0 %v4071_v18  ;;  %3791 = vmatprep.subr.bf16.mxu1 %v4660_v19  ;;  %v837_v18 = vrot.slane %v4757_v9, 1  ;;  %v840_v27 = vrot.slane %v4767_v17, 1 }
  0xa3   : > { %v4788_v37 = vsel %vm797_vm1, %v840_v27, %v841_v34  ;;  %v4848_v27 = vld [vmem:[%s4619_s10 + $0x8] ss:$0 sps:$4 sm:$0xff]  }
  0xa4   : > { %3246 = vmatpush3.bf16.msra.mxu0 %v4073_v20  ;;  %3799 = vmatpush3.bf16.msra.mxu1 %v4660_v19  ;;  %v4103_v20 = vld [vmem:[#allocation7 + $0x60] sm:$0xff]  }
  0xa5   : > { %3247 = vmatprep.subr.bf16.mxu0 %v4074_v21  ;;  %3792 = vmatprep.subr.bf16.mxu1 %v4662_v22  ;;  %v604_v21 = vrot.slane %v602_v12, 1 }
  0xa7   : > { %v605_v29 = vor.u32 %v604_v21, %v600_v11 }
  0xa8   : > { %3248 = vmatpush3.bf16.msra.mxu0 %v4076_v25  ;;  %3800 = vmatpush3.bf16.msra.mxu1 %v4662_v22  ;;  %v609_v25 = vrot.slane %v607_v14, 1  ;;  %v4835_v14 = vld [vmem:[%s4619_s10 + $0x3c] sm:$0xff]  }
  0xa9   : > { %3641 = vmatprep.subr.bf16.mxu0 %v4637_v1  ;;  %3369 = vmatprep.subr.bf16.mxu1 %v4083_v33  ;;  %v4104_v33 = vld [vmem:[#allocation7 + $0x20] sm:$0xff]   ;;  %v624_v21 = vshrl.u32 %v4835_v14, 16 }
  0xaa   : > { %v4784_v36 = vsel %vm562_vm0, %v605_v29, %v609_v25  ;;  %v626_v25 = vshll.u32 %v4835_v14, 16  ;;  %v4121_v29 = vld [vmem:[#allocation7 + $0x80] sm:$0xff]  }
  0xab   : > { %1144 = vmatmul.mubr.bf16.vlgmr.msra.gmra.mrb[0].mxu0 %v4667_v23  ;;  %3674 = vmatmul.mubr.bf16.vlgmr.msra.gmra.mrb[0].mxu1 %v4704_v45 }
  0xac   : > { %3642 = vmatpush3.bf16.msra.mxu0 %v4637_v1  ;;  %3370 = vmatpush3.bf16.msra.mxu1 %v4084_v42  ;;  %v835_v1 = vrot.slane %v4732_v61, 1  ;;  %v4799_v42 = vld [vmem:[%s4619_s10 + $0xb4] sm:$0xff]  }
  0xad   : > { %3371 = vmatprep.subr.bf16.mxu1 %v4085_v44  ;;  %3643 = vmatprep.subr.bf16.mxu0 %v4641_v4  ;;  %v612_v44 = vshrl.u32 %v4793_v39, 16  ;;  %v843_v55 = vrot.slane %v4799_v42, 1 }
  0xae   : > { %3677 = vmatprep.mubr.bf16.mxu1 %v4736_v63  ;;  %1151 = vmatprep.mubr.bf16.mxu0 %v4742_v3  ;;  %v4746_v5 = vsel %vm797_vm1, %v834_v60, %v835_v1  ;;  %v4816_v60 = vld [vmem:[%s4627_s7 + $0x8] ss:$0 sps:$4 sm:$0xff]  }
  0xaf   : > { %v4114_v1 = vld [vmem:[#allocation7 + $0x30] sm:$0xff]  }
  0xb0   : > { %3372 = vmatpush3.bf16.msra.mxu1 %v4086_v46  ;;  %3644 = vmatpush3.bf16.msra.mxu0 %v4641_v4  ;;  %v4096_v4 = vld [vmem:[#allocation7 + $0x18] sm:$0xff]   ;;  %v614_v46 = vshll.u32 %v4793_v39, 16 }
  0xb1   : > { %3373 = vmatprep.subr.bf16.mxu1 %v4093_v56  ;;  %3645 = vmatprep.subr.bf16.mxu0 %v4644_v7  ;;  %v4113_v56 = vld [vmem:[#allocation7 + $0x70] sm:$0xff]  }
  0xb2   : > { %v616_v57 = vrot.slane %v614_v46, 1 }
  0xb3   : > { %1152 = vmatmul.mubr.bf16.gmra.mrb[4].mxu0 %v4709_v47  ;;  %3678 = vmatmul.mubr.bf16.gmra.mrb[4].mxu1 %v4746_v5 }
  0xb4   : > { %3374 = vmatpush3.bf16.msra.mxu1 %v4094_v0  ;;  %3646 = vmatpush3.bf16.msra.mxu0 %v4644_v7  ;;  %v838_v7 = vrot.slane %v4764_v15, 1  ;;  %v617_v62 = vor.u32 %v616_v57, %v612_v44  ;;  %v4855_v44 = vld [vmem:[%s4619_s10 + $0x48] sm:$0xff]   ;;  %v4862_v57 = vld [vmem:[%s4619_s10 + $0x50] ss:$0 sps:$4 sm:$0xff]  }
  0xb5   : > { %3375 = vmatprep.subr.bf16.mxu1 %v4095_v2  ;;  %3647 = vmatprep.subr.bf16.mxu0 %v4648_v10  ;;  %v847_v2 = vrot.slane %v4816_v60, 1 }
  0xb6   : > { %v4778_v32 = vsel %vm797_vm1, %v837_v18, %v838_v7  ;;  %1159 = vmatprep.mubr.bf16.mxu0 %v4784_v36  ;;  %v4826_v11 = vsel %vm562_vm0, %v617_v62, %v621_v58  ;;  %v4838_v18 = vld [vmem:[%s4619_s10 + $0x44] ss:$0 sps:$4 sm:$0xff]   ;;  %v636_v58 = vshrl.u32 %v4855_v44, 16 }
  0xb7   : > { %3681 = vmatprep.mubr.bf16.mxu1 %v4778_v32  ;;  %v4830_v12 = vsel %vm797_vm1, %v846_v59, %v847_v2  ;;  %v631_v7 = vshll.u32 %v4838_v18, 16  ;;  %v643_v2 = vshll.u32 %v4862_v57, 16 }
  0xb8   : > { %3376 = vmatpush3.bf16.msra.mxu1 %v4096_v4  ;;  %3648 = vmatpush3.bf16.msra.mxu0 %v4648_v10  ;;  %v4106_v10 = vld [vmem:[#allocation7 + $0x28] sm:$0xff]   ;;  %v4115_v4 = vld [vmem:[#allocation7 + $0x78] sm:$0xff]  }
  0xb9   : > { %3377 = vmatprep.subr.bf16.mxu1 %v4103_v20  ;;  %3649 = vmatprep.subr.bf16.mxu0 %v4652_v13  ;;  %v4841_v20 = vld [vmem:[%s4619_s10] sm:$0xff]  }
  0xba   : > { %v566_v34 = vshll.u32 %v4841_v20, 16 }
  0xbb   : > { %1160 = vmatmul.mubr.bf16.gmra.mrb[8].mxu0 %v4751_v6  ;;  %3682 = vmatmul.mubr.bf16.gmra.mrb[8].mxu1 %v4788_v37 }
  0xbc   : > { %3378 = vmatpush3.bf16.msra.mxu1 %v4104_v33  ;;  %3650 = vmatpush3.bf16.msra.mxu0 %v4652_v13  ;;  %v844_v13 = vrot.slane %v4806_v51, 1  ;;  %v564_v33 = vshrl.u32 %v4841_v20, 16  ;;  %v568_v46 = vrot.slane %v566_v34, 1  ;;  %v645_v34 = vrot.slane %v643_v2, 1 }
  0xbd   : > { %3379 = vmatprep.subr.bf16.mxu1 %v4105_v35  ;;  %3651 = vmatprep.subr.bf16.mxu0 %v4656_v16  ;;  %v628_v35 = vrot.slane %v626_v25, 1  ;;  %v648_v25 = vshrl.u32 %v4858_v50, 16 }
  0xbe   : > { %v4820_v0 = vsel %vm797_vm1, %v843_v55, %v844_v13  ;;  %1167 = vmatprep.mubr.bf16.mxu0 %v4826_v11  ;;  %v638_v13 = vshll.u32 %v4855_v44, 16  ;;  %v569_v59 = vor.u32 %v568_v46, %v564_v33 }
  0xbf   : > { %3685 = vmatprep.mubr.bf16.mxu1 %v4820_v0  ;;  %v629_v55 = vor.u32 %v628_v35, %v624_v21 }
  0xc0   : > { %3380 = vmatpush3.bf16.msra.mxu1 %v4106_v10  ;;  %3652 = vmatpush3.bf16.msra.mxu0 %v4656_v16  ;;  %v4116_v16 = vld [vmem:[#allocation7 + $0x38] sm:$0xff]   ;;  %v571_v10 = vshll.u32 %v4848_v27, 16 }
  0xc1   : > { %3381 = vmatprep.subr.bf16.mxu1 %v4113_v56  ;;  %3653 = vmatprep.subr.bf16.mxu0 %v4660_v19 }
  0xc2   : > { %v573_v56 = vrot.slane %v571_v10, 1  ;;  %v4884_v10 = vld [vmem:[%s4619_s10 + $0x68] ss:$0 sps:$4 sm:$0xff]  }
  0xc3   : > { %1168 = vmatmul.mubr.bf16.gmra.mrb[12].mxu0 %v4793_v39  ;;  %3686 = vmatmul.mubr.bf16.gmra.mrb[12].mxu1 %v4830_v12  ;;  %v667_v2 = vshll.u32 %v4884_v10, 16 }
  0xc4   : > { %3382 = vmatpush3.bf16.msra.mxu1 %v4114_v1  ;;  %3654 = vmatpush3.bf16.msra.mxu0 %v4660_v19  ;;  %v633_v19 = vrot.slane %v631_v7, 1  ;;  %v640_v1 = vrot.slane %v638_v13, 1  ;;  %v574_v21 = vsel %vm562_vm0, %v569_v59, %v573_v56  ;;  %v650_v7 = vshll.u32 %v4858_v50, 16  ;;  %v4129_v13 = vld [vmem:[#allocation7 + $0x90] sm:$0xff]  }
  0xc5   : > { %3383 = vmatprep.subr.bf16.mxu1 %v4115_v4  ;;  %3655 = vmatprep.subr.bf16.mxu0 %v4662_v22  ;;  %v4871_v4 = vld [vmem:[%s4619_s10 + $0x5c] ss:$0 sps:$4 sm:$0xff]  }
  0xc6   : > { %v4867_v62 = vsel %vm562_vm0, %v629_v55, %v633_v19  ;;  %1609 = vmatprep.mubr.bf16.mxu1 %v574_v21  ;;  %v641_v33 = vor.u32 %v640_v1, %v636_v58  ;;  %v655_v35 = vshll.u32 %v4871_v4, 16  ;;  %v652_v19 = vrot.slane %v650_v7, 1  ;;  %v4130_v21 = vld [vmem:[#allocation7 + $0x98] sm:$0xff]  }
  0xc7   : > { %1175 = vmatprep.mubr.bf16.mxu0 %v4867_v62  ;;  %v674_v7 = vshll.u32 %v4673_v26, 16 }
  0xc8   : > { %3384 = vmatpush3.bf16.msra.mxu1 %v4116_v16  ;;  %3656 = vmatpush3.bf16.msra.mxu0 %v4662_v22  ;;  %v4126_v16 = vld [vmem:[#allocation7 + $0x88] sm:$0xff]   ;;  %v4874_v22 = vld [vmem:[%s4619_s10 + $0x60] sm:$0xff]   ;;  %v4887_v46 = vsel %vm562_vm0, %v641_v33, %v645_v34  ;;  %v657_v55 = vrot.slane %v655_v35, 1  ;;  %v653_v58 = vor.u32 %v652_v19, %v648_v25  ;;  %v669_v25 = vrot.slane %v667_v2, 1  ;;  %v4131_v33 = vld [vmem:[#allocation7 + $0xa0] sm:$0xff]  }
  0xc9   : > { %3689 = vmatprep.subr.bf16.mxu1 %v4121_v29  ;;  %v662_v56 = vshll.u32 %v4874_v22, 16  ;;  %v660_v1 = vshrl.u32 %v4874_v22, 16  ;;  %v801_v34 = vrot.slane %v4667_v23, 1  ;;  %v802_v35 = vrot.slane %v4670_v24, 1 }
  0xca   : > { %v4893_v59 = vsel %vm562_vm0, %v653_v58, %v657_v55  ;;  %v672_v19 = vshrl.u32 %v4673_v26, 16  ;;  %v679_v58 = vshll.u32 %v4679_v30, 16  ;;  %v4133_v30 = vld [vmem:[#allocation7 + $0xb0] sm:$0xff]   ;;  %v691_v2 = vshll.u32 %v4690_v38, 16 }
  0xcb   : > { %1176 = vmatmul.mubr.bf16.gmra.mrb[16].mxu0 %v4835_v14  ;;  %1610 = vmatmul.mubr.bf16.vlgmr.msra.gmra.mrb[16].mxu1 %v4841_v20 }
  0xcc   : > { %3690 = vmatpush3.bf16.msra.mxu1 %v4121_v29  ;;  %1617 = vmatprep.mubr.bf16.mxu1 %v4698_v43  ;;  %v664_v29 = vrot.slane %v662_v56, 1  ;;  %v676_v56 = vrot.slane %v674_v7, 1  ;;  %v681_v24 = vrot.slane %v679_v58, 1  ;;  %v4142_v7 = vld [vmem:[#allocation7 + $0xb8] sm:$0xff]   ;;  %v4933_v58 = vld [vmem:[#allocation7 + $0x200] sm:$0xff]  }
  0xcd   : > { %1183 = vmatprep.mubr.bf16.mxu0 %v4887_v46  ;;  %3691 = vmatprep.subr.bf16.mxu1 %v4126_v16 }
  0xce   : > { %v665_v43 = vor.u32 %v664_v29, %v660_v1  ;;  %v4910_v1 = vsel %vm797_vm1, %v801_v34, %v802_v35  ;;  %v686_v29 = vshll.u32 %v4682_v31, 16  ;;  %v698_v34 = vshll.u32 %v4716_v49, 16 }
  0xcf   : > { %v799_v35 = vrot.slane %v4848_v27, 1 }
  0xd0   : > { %3692 = vmatpush3.bf16.msra.mxu1 %v4126_v16  ;;  %v4134_v16 = vld [vmem:[#allocation7 + $0x1c0] sm:$0xff]   ;;  %v4906_v55 = vsel %vm562_vm0, %v665_v43, %v669_v25  ;;  %v684_v43 = vshrl.u32 %v4682_v31, 16  ;;  %v688_v25 = vrot.slane %v686_v29, 1 }
  0xd1   : > { %3693 = vmatprep.subr.bf16.mxu1 %v4129_v13  ;;  %3505 = vmatprep.subr.bf16.mxu0 %v4134_v16  ;;  %v693_v16 = vrot.slane %v691_v2, 1 }
  0xd2   : > { %v689_v38 = vor.u32 %v688_v25, %v684_v43  ;;  %v715_v43 = vshll.u32 %v4732_v61, 16  ;;  %v727_v61 = vshll.u32 %v4764_v15, 16  ;;  %v739_v15 = vshll.u32 %v4774_v28, 16 }
  0xd3   : > { %1184 = vmatmul.mubr.bf16.gmra.mrb[20].mxu0 %v4855_v44  ;;  %1618 = vmatmul.mubr.bf16.gmra.mrb[20].mxu1 %v4667_v23  ;;  %v677_v23 = vor.u32 %v676_v56, %v672_v19  ;;  %v703_v56 = vshll.u32 %v4722_v53, 16  ;;  %v710_v53 = vshll.u32 %v4725_v54, 16  ;;  %v751_v28 = vshll.u32 %v4806_v51, 16 }
  0xd4   : > { %1191 = vmatprep.mubr.bf16.mxu0 %v4893_v59  ;;  %1625 = vmatprep.mubr.bf16.mxu1 %v4742_v3  ;;  %v763_v51 = vshll.u32 %v4816_v60, 16  ;;  %v805_v60 = vrot.slane %v4712_v48, 1  ;;  %v4137_v48 = vld [vmem:[#allocation7 + $0x188] sm:$0xff]  }
  0xd5   : > { %3694 = vmatpush3.bf16.msra.mxu1 %v4129_v13  ;;  %v4132_v13 = vld [vmem:[#allocation7 + $0xa8] sm:$0xff]   ;;  %v705_v27 = vrot.slane %v703_v56, 1  ;;  %v712_v2 = vrot.slane %v710_v53, 1  ;;  %v729_v56 = vrot.slane %v727_v61, 1 }
  0xd6   : > { %3695 = vmatprep.subr.bf16.mxu1 %v4130_v21 }
  0xd9   : > { %3696 = vmatpush3.bf16.msra.mxu1 %v4130_v21  ;;  %v4919_v21 = vsel %vm562_vm0, %v677_v23, %v681_v24  ;;  %v700_v23 = vrot.slane %v698_v34, 1 }
  0xda   : > { %3697 = vmatprep.subr.bf16.mxu1 %v4131_v33 }
  0xdb   : > { %1192 = vmatmul.mubr.bf16.gmra.mrb[24].mxu0 %v4858_v50  ;;  %1626 = vmatmul.mubr.bf16.gmra.mrb[24].mxu1 %v4709_v47 }
  0xdc   : > { %1199 = vmatprep.mubr.bf16.mxu0 %v4906_v55  ;;  %1633 = vmatprep.mubr.bf16.mxu1 %v4784_v36 }
  0xdd   : > { %3698 = vmatpush3.bf16.msra.mxu1 %v4131_v33  ;;  %v798_v33 = vrot.slane %v4841_v20, 1  ;;  %v696_v20 = vshrl.u32 %v4716_v49, 16 }
  0xde   : > { %3699 = vmatprep.subr.bf16.mxu1 %v4132_v13 }
  0xdf   : > { %v4930_v19 = vsel %vm797_vm1, %v798_v33, %v799_v35  ;;  %v701_v24 = vor.u32 %v700_v23, %v696_v20  ;;  %v734_v20 = vshll.u32 %v4767_v17, 16 }
  0xe1   : > { %3700 = vmatpush3.bf16.msra.mxu1 %v4132_v13  ;;  %v4936_v13 = vsel %vm562_vm0, %v689_v38, %v693_v16  ;;  %v4946_v29 = vsel %vm562_vm0, %v701_v24, %v705_v27  ;;  %v722_v16 = vshll.u32 %v4757_v9, 16  ;;  %v720_v38 = vshrl.u32 %v4757_v9, 16 }
  0xe2   : > { %3701 = vmatprep.subr.bf16.mxu1 %v4133_v30  ;;  %v732_v27 = vshrl.u32 %v4767_v17, 16  ;;  %v736_v53 = vrot.slane %v734_v20, 1 }
  0xe3   : > { %1200 = vmatmul.mubr.bf16.gmra.mrb[28].mxu0 %v4874_v22  ;;  %1634 = vmatmul.mubr.bf16.gmra.mrb[28].mxu1 %v4751_v6  ;;  %v724_v34 = vrot.slane %v722_v16, 1 }
  0xe4   : > { %1207 = vmatprep.mubr.bf16.mxu0 %v4919_v21  ;;  %1641 = vmatprep.mubr.bf16.mxu1 %v4826_v11  ;;  %v737_v24 = vor.u32 %v736_v53, %v732_v27  ;;  %v765_v27 = vrot.slane %v763_v51, 1  ;;  %v819_v51 = vrot.slane %v4858_v50, 1 }
  0xe5   : > { %3702 = vmatpush3.bf16.msra.mxu1 %v4133_v30  ;;  %v708_v30 = vshrl.u32 %v4725_v54, 16  ;;  %v725_v35 = vor.u32 %v724_v34, %v720_v38  ;;  %v753_v38 = vrot.slane %v751_v28, 1  ;;  %v758_v34 = vshll.u32 %v4809_v52, 16 }
  0xe6   : > { %3703 = vmatprep.subr.bf16.mxu1 %v4142_v7  ;;  %v814_v28 = vrot.slane %v4838_v18, 1  ;;  %v817_v18 = vrot.slane %v4862_v57, 1  ;;  %v4146_v57 = vld [vmem:[#allocation7 + $0x1a8] sm:$0xff]  }
  0xe7   : > { %v713_v25 = vor.u32 %v712_v2, %v708_v30  ;;  %v4966_v23 = vsel %vm562_vm0, %v725_v35, %v729_v56  ;;  %v741_v30 = vrot.slane %v739_v15, 1  ;;  %v746_v2 = vshll.u32 %v4799_v42, 16 }
  0xe8   : > { %v756_v35 = vshrl.u32 %v4809_v52, 16  ;;  %v760_v56 = vrot.slane %v758_v34, 1  ;;  %v807_v15 = vrot.slane %v4751_v6, 1 }
  0xe9   : > { %3704 = vmatpush3.bf16.msra.mxu1 %v4142_v7  ;;  %v717_v7 = vrot.slane %v715_v43, 1  ;;  %v4976_v43 = vsel %vm562_vm0, %v737_v24, %v741_v30  ;;  %v4135_v30 = vld [vmem:[#allocation7 + $0x180] sm:$0xff]  }
  0xea   : > { %3737 = vmatprep.subr.bf16.mxu1 %v4933_v58  ;;  %v761_v20 = vor.u32 %v760_v56, %v756_v35  ;;  %v816_v35 = vrot.slane %v4855_v44, 1  ;;  %v4143_v56 = vld [vmem:[#allocation7 + $0x1e0] sm:$0xff]  }
  0xeb   : > { %1208 = vmatmul.mubr.bf16.gmra.mrb[32].mxu0 %v4673_v26  ;;  %1642 = vmatmul.mubr.bf16.gmra.mrb[32].mxu1 %v4793_v39  ;;  %v4956_v33 = vsel %vm562_vm0, %v713_v25, %v717_v7  ;;  %v744_v25 = vshrl.u32 %v4799_v42, 16  ;;  %v748_v7 = vrot.slane %v746_v2, 1  ;;  %v4136_v2 = vld [vmem:[#allocation7 + $0x1c8] sm:$0xff]  }
  0xec   : > { %1215 = vmatprep.mubr.bf16.mxu0 %v4936_v13  ;;  %1649 = vmatprep.mubr.bf16.mxu1 %v4867_v62  ;;  %v4995_v53 = vsel %vm562_vm0, %v761_v20, %v765_v27  ;;  %v820_v20 = vrot.slane %v4871_v4, 1  ;;  %v5038_v27 = vsel %vm797_vm1, %v816_v35, %v817_v18  ;;  %v823_v4 = vrot.slane %v4884_v10, 1  ;;  %v4152_v10 = vld [vmem:[#allocation7 + $0x208] sm:$0xff]  }
  0xed   : > { %v749_v16 = vor.u32 %v748_v7, %v744_v25  ;;  %v811_v25 = vrot.slane %v4796_v41, 1  ;;  %v813_v7 = vrot.slane %v4835_v14, 1  ;;  %v4141_v41 = vld [vmem:[#allocation7 + $0x198] sm:$0xff]  }
  0xef   : > { %v4986_v61 = vsel %vm562_vm0, %v749_v16, %v753_v38  ;;  %v4140_v38 = vld [vmem:[#allocation7 + $0x1d8] sm:$0xff]   ;;  %v5027_v34 = vsel %vm797_vm1, %v813_v7, %v814_v28 }
  0xf3   : > { %1216 = vmatmul.mubr.bf16.gmra.mrb[36].mxu0 %v4682_v31  ;;  %1650 = vmatmul.mubr.bf16.gmra.mrb[36].mxu1 %v4835_v14 }
  0xf4   : > { %1223 = vmatprep.mubr.bf16.mxu0 %v4946_v29  ;;  %1657 = vmatprep.mubr.bf16.mxu1 %v4887_v46 }
  0xfb   : > { %1224 = vmatmul.mubr.bf16.gmra.mrb[40].mxu0 %v4716_v49  ;;  %1658 = vmatmul.mubr.bf16.gmra.mrb[40].mxu1 %v4855_v44 }
  0xfc   : > { %1231 = vmatprep.mubr.bf16.mxu0 %v4956_v33  ;;  %1665 = vmatprep.mubr.bf16.mxu1 %v4893_v59 }
 0x103   : > { %1232 = vmatmul.mubr.bf16.gmra.mrb[44].mxu0 %v4725_v54  ;;  %1666 = vmatmul.mubr.bf16.gmra.mrb[44].mxu1 %v4858_v50 }
 0x104   : > { %1239 = vmatprep.mubr.bf16.mxu0 %v4966_v23  ;;  %1673 = vmatprep.mubr.bf16.mxu1 %v4906_v55 }
 0x10b   : > { %1240 = vmatmul.mubr.bf16.gmra.mrb[48].mxu0 %v4757_v9  ;;  %1674 = vmatmul.mubr.bf16.gmra.mrb[48].mxu1 %v4874_v22 }
 0x10c   : > { %1247 = vmatprep.mubr.bf16.mxu0 %v4976_v43  ;;  %1681 = vmatprep.mubr.bf16.mxu1 %v4919_v21 }
 0x113   : > { %1248 = vmatmul.mubr.bf16.gmra.mrb[52].mxu0 %v4767_v17  ;;  %1682 = vmatmul.mubr.bf16.gmra.mrb[52].mxu1 %v4673_v26  ;;  %v804_v26 = vrot.slane %v4709_v47, 1 }
 0x114   : > { %1255 = vmatprep.mubr.bf16.mxu0 %v4986_v61  ;;  %1689 = vmatprep.mubr.bf16.mxu1 %v4936_v13 }
 0x115   : > { %v5010_v24 = vsel %vm797_vm1, %v804_v26, %v805_v60  ;;  %v4145_v26 = vld [vmem:[#allocation7 + $0x1e8] sm:$0xff]   ;;  %v5041_v60 = vsel %vm797_vm1, %v819_v51, %v820_v20 }
 0x11b   : > { %1256 = vmatmul.mubr.bf16.gmra.mrb[56].mxu0 %v4799_v42  ;;  %1690 = vmatmul.mubr.bf16.gmra.mrb[56].mxu1 %v4682_v31  ;;  %v808_v31 = vrot.slane %v4754_v8, 1  ;;  %v4138_v8 = vld [vmem:[#allocation7 + $0x1d0] sm:$0xff]  }
 0x11c   : > { %1263 = vmatprep.mubr.bf16.mxu0 %v4995_v53  ;;  %1697 = vmatprep.mubr.bf16.mxu1 %v4946_v29 }
 0x123   : > { %1264 = vmatmul.mubr.bf16.gmra.mrb[60].mxu0 %v4809_v52  ;;  %1698 = vmatmul.mubr.bf16.gmra.mrb[60].mxu1 %v4716_v49  ;;  %v5013_v52 = vsel %vm797_vm1, %v807_v15, %v808_v31  ;;  %v810_v49 = vrot.slane %v4793_v39, 1  ;;  %v822_v15 = vrot.slane %v4874_v22, 1  ;;  %v4147_v31 = vld [vmem:[#allocation7 + $0x1f0] sm:$0xff]  }
 0x124   : > { %3657 = vmatprep.mubr.bf16.mxu0 %v4910_v1  ;;  %1705 = vmatprep.mubr.bf16.mxu1 %v4956_v33 }
 0x125   : > { %v5024_v16 = vsel %vm797_vm1, %v810_v49, %v811_v25  ;;  %v4154_v49 = vld [vmem:[#allocation7 + $0x218] sm:$0xff]  }
 0x12b   : > { %3658 = vmatmul.mubr.bf16.vlgmr.msra.gmra.mrb[64].mxu0 %v5010_v24  ;;  %1706 = vmatmul.mubr.bf16.gmra.mrb[64].mxu1 %v4725_v54  ;;  %v4139_v54 = vld [vmem:[#allocation7 + $0x190] sm:$0xff]  }
 0x12c   : > { %3506 = vmatpush3.bf16.msra.mxu0 %v4135_v30  ;;  %3661 = vmatprep.mubr.bf16.mxu0 %v5013_v52  ;;  %v5050_v30 = vsel %vm797_vm1, %v822_v15, %v823_v4 }
 0x12d   : > { %3507 = vmatprep.subr.bf16.mxu0 %v4136_v2  ;;  %1713 = vmatprep.mubr.bf16.mxu1 %v4966_v23  ;;  %v4148_v2 = vld [vmem:[#allocation7 + $0x1b0] sm:$0xff]  }
 0x130   : > { %3508 = vmatpush3.bf16.msra.mxu0 %v4137_v48  ;;  %v4149_v48 = vld [vmem:[#allocation7 + $0x1f8] sm:$0xff]  }
 0x131   : > { %3509 = vmatprep.subr.bf16.mxu0 %v4138_v8 }
 0x133   : > { %3662 = vmatmul.mubr.bf16.gmra.mrb[68].mxu0 %v5024_v16  ;;  %1714 = vmatmul.mubr.bf16.gmra.mrb[68].mxu1 %v4757_v9  ;;  %v4144_v9 = vld [vmem:[#allocation7 + $0x1a0] sm:$0xff]  }
 0x134   : > { %3510 = vmatpush3.bf16.msra.mxu0 %v4139_v54  ;;  %3665 = vmatprep.mubr.bf16.mxu0 %v5027_v34 }
 0x135   : > { %3511 = vmatprep.subr.bf16.mxu0 %v4140_v38  ;;  %1721 = vmatprep.mubr.bf16.mxu1 %v4976_v43 }
 0x138   : > { %3512 = vmatpush3.bf16.msra.mxu0 %v4141_v41 }
 0x139   : > { %3513 = vmatprep.subr.bf16.mxu0 %v4143_v56  ;;  %v4164_v56 = vld [vmem:[%s4619_s10 + $0x90] sm:$0xff]  }
 0x13b   : > { %3666 = vmatmul.mubr.bf16.gmra.mrb[72].mxu0 %v5038_v27  ;;  %1722 = vmatmul.mubr.bf16.gmra.mrb[72].mxu1 %v4767_v17  ;;  %v4150_v17 = vld [vmem:[#allocation7 + $0x1b8] sm:$0xff]  }
 0x13c   : > { %3514 = vmatpush3.bf16.msra.mxu0 %v4144_v9  ;;  %3669 = vmatprep.mubr.bf16.mxu0 %v5041_v60 }
 0x13d   : > { %3515 = vmatprep.subr.bf16.mxu0 %v4145_v26  ;;  %1729 = vmatprep.mubr.bf16.mxu1 %v4986_v61 }
 0x140   : > { %3516 = vmatpush3.bf16.msra.mxu0 %v4146_v57 }
 0x141   : > { %3517 = vmatprep.subr.bf16.mxu0 %v4147_v31 }
 0x143   : > { %3670 = vmatmul.mubr.bf16.gmra.mrb[76].mxu0 %v5050_v30  ;;  %1730 = vmatmul.mubr.bf16.gmra.mrb[76].mxu1 %v4799_v42  ;;  %v4153_v42 = vld [vmem:[#allocation7 + $0x210] sm:$0xff]  }
 0x144   : > { %3518 = vmatpush3.bf16.msra.mxu0 %v4148_v2  ;;  %3705 = vmatprep.mubr.bf16.mxu1 %v4930_v19  ;;  %v4161_v19 = vld [vmem:[%s4619_s10 + $0x6c] sm:$0xff]  }
 0x145   : > { %3519 = vmatprep.subr.bf16.mxu0 %v4149_v48  ;;  %2124 = vmatprep.mubr.bf16.mxu0 %v4742_v3  ;;  %v4156_v3 = vld [vmem:[#allocation7 + $0x228] sm:$0xff]  }
 0x148   : > { %3520 = vmatpush3.bf16.msra.mxu0 %v4150_v17 }
 0x14b   : > { %2125 = vmatmul.mubr.bf16.vlgmr.msra.gmra.mrb[80].mxu0 %v4709_v47  ;;  %3706 = vmatmul.mubr.bf16.vlgmr.msra.gmra.mrb[80].mxu1 %v4910_v1  ;;  %v4155_v47 = vld [vmem:[#allocation7 + $0x220] sm:$0xff]  }
 0x14c   : > { %2132 = vmatprep.mubr.bf16.mxu0 %v4784_v36  ;;  %3738 = vmatpush3.bf16.msra.mxu1 %v4933_v58  ;;  %v4158_v36 = vld [vmem:[#allocation7 + $0x238] sm:$0xff]  }
 0x14d   : > { %3709 = vmatprep.mubr.bf16.mxu1 %v5010_v24  ;;  %3739 = vmatprep.subr.bf16.mxu1 %v4152_v10 }
 0x150   : > { %3740 = vmatpush3.bf16.msra.mxu1 %v4152_v10 }
 0x151   : > { %3741 = vmatprep.subr.bf16.mxu1 %v4153_v42 }
 0x153   : > { %2133 = vmatmul.mubr.bf16.gmra.mrb[84].mxu0 %v4751_v6  ;;  %3710 = vmatmul.mubr.bf16.gmra.mrb[84].mxu1 %v5013_v52  ;;  %v4157_v6 = vld [vmem:[#allocation7 + $0x230] sm:$0xff]  }
 0x154   : > { %2140 = vmatprep.mubr.bf16.mxu0 %v4826_v11  ;;  %3713 = vmatprep.mubr.bf16.mxu1 %v5024_v16 }
 0x155   : > { %3742 = vmatpush3.bf16.msra.mxu1 %v4153_v42 }
 0x156   : > { %3743 = vmatprep.subr.bf16.mxu1 %v4154_v49 }
 0x159   : > { %3744 = vmatpush3.bf16.msra.mxu1 %v4154_v49 }
 0x15a   : > { %3745 = vmatprep.subr.bf16.mxu1 %v4155_v47 }
 0x15b   : > { %2141 = vmatmul.mubr.bf16.gmra.mrb[88].mxu0 %v4793_v39  ;;  %3714 = vmatmul.mubr.bf16.gmra.mrb[88].mxu1 %v5027_v34 }
 0x15c   : > { %2148 = vmatprep.mubr.bf16.mxu0 %v4867_v62  ;;  %3717 = vmatprep.mubr.bf16.mxu1 %v5038_v27 }
 0x15d   : > { %3746 = vmatpush3.bf16.msra.mxu1 %v4155_v47 }
 0x15e   : > { %3747 = vmatprep.subr.bf16.mxu1 %v4156_v3 }
 0x161   : > { %3748 = vmatpush3.bf16.msra.mxu1 %v4156_v3  ;;  %v5134_v3 = vld [vmem:[%s4627_s7 + $0xc] sm:$0xff]  }
 0x162   : > { %3749 = vmatprep.subr.bf16.mxu1 %v4157_v6 }
 0x163   : > { %2149 = vmatmul.mubr.bf16.gmra.mrb[92].mxu0 %v4835_v14  ;;  %3718 = vmatmul.mubr.bf16.gmra.mrb[92].mxu1 %v5041_v60 }
 0x164   : > { %2156 = vmatprep.mubr.bf16.mxu0 %v4887_v46  ;;  %3721 = vmatprep.mubr.bf16.mxu1 %v5050_v30 }
 0x165   : > { %3750 = vmatpush3.bf16.msra.mxu1 %v4157_v6 }
 0x166   : > { %3751 = vmatprep.subr.bf16.mxu1 %v4158_v36 }
 0x169   : > { %3752 = vmatpush3.bf16.msra.mxu1 %v4158_v36  ;;  %v4160_v36 = vld [vmem:[%s4627_s7 + $0x14] ss:$0 sps:$4 sm:$0xff]  }
 0x16b   : > { %2157 = vmatmul.mubr.bf16.gmra.mrb[96].mxu0 %v4855_v44  ;;  %3722 = vmatmul.mubr.bf16.gmra.mrb[0].mxu1 %v4693_v40 }
 0x16c   : > { %2164 = vmatprep.mubr.bf16.mxu0 %v4893_v59  ;;  %3725 = vmatprep.mubr.bf16.mxu1 %v4704_v45 }
 0x173   : > { %2165 = vmatmul.mubr.bf16.gmra.mrb[100].mxu0 %v4858_v50  ;;  %3726 = vmatmul.mubr.bf16.gmra.mrb[4].mxu1 %v4736_v63 }
 0x174   : > { %2172 = vmatprep.mubr.bf16.mxu0 %v4906_v55  ;;  %3729 = vmatprep.mubr.bf16.mxu1 %v4746_v5 }
 0x17b   : > { %2173 = vmatmul.mubr.bf16.gmra.mrb[104].mxu0 %v4874_v22  ;;  %3730 = vmatmul.mubr.bf16.gmra.mrb[8].mxu1 %v4778_v32 }
 0x17c   : > { %2180 = vmatprep.mubr.bf16.mxu0 %v4919_v21  ;;  %3733 = vmatprep.mubr.bf16.mxu1 %v4788_v37  ;;  %v4162_v21 = vld [vmem:[%s4619_s10 + $0x78] sm:$0xff]  }
 0x17e   : > { %v3249_v39 = vpop.f32.mrb[0].mxu0 }
 0x17f   : > { %v3250_v11 = vpop.f32.mrb[1].mxu0 }
 0x180   : > { %v5081_v14 = vadd.f32 %v3250_v11, %v3249_v39  ;;  %v3252_v44 = vpop.f32.mrb[2].mxu0  ;;  %v770_v39 = vshll.u32 %v5134_v3, 16 }
 0x181   : > { %v3253_v62 = vpop.f32.mrb[3].mxu0 }
 0x182   : > { %v5083_v46 = vadd.f32 %v3253_v62, %v3252_v44 }
 0x183   : > { %2181 = vmatmul.mubr.bf16.gmra.mrb[108].mxu0 %v4161_v19  ;;  %3734 = vmatmul.mubr.bf16.gmra.mrb[12].mxu1 %v4820_v0 }
 0x184   : > { %2188 = vmatprep.mubr.bf16.mxu0 %v4936_v13  ;;  %3753 = vmatprep.mubr.bf16.mxu1 %v5010_v24  ;;  %v4163_v13 = vld [vmem:[%s4619_s10 + $0x84] sm:$0xff]  }
 0x186   : > { %v3255_v50 = vpop.f32.mrb[4].mxu0 }
 0x187   : > { %v3256_v59 = vpop.f32.mrb[5].mxu0 }
 0x188   : > { %v5089_v55 = vadd.f32 %v3256_v59, %v3255_v50  ;;  %v3258_v1 = vpop.f32.mrb[6].mxu0 }
 0x189   : > { %v3259_v58 = vpop.f32.mrb[7].mxu0 }
 0x18a   : > { %v5093_v25 = vadd.f32 %v3259_v58, %v3258_v1 }
 0x18b   : > { %2189 = vmatmul.mubr.bf16.gmra.mrb[112].mxu0 %v4162_v21  ;;  %3754 = vmatmul.mubr.bf16.vlgmr.msra.gmra.mrb[80].mxu1 %v5013_v52  ;;  %v775_v21 = vshll.u32 %v4160_v36, 16 }
 0x18c   : > { %2196 = vmatprep.mubr.bf16.mxu0 %v4946_v29  ;;  %3757 = vmatprep.mubr.bf16.mxu1 %v5024_v16 }
 0x18e   : > { %v3261_v22 = vpop.f32.mrb[8].mxu0 }
 0x18f   : > { %v3262_v8 = vpop.f32.mrb[9].mxu0 }
 0x190   : > { %v5099_v7 = vadd.f32 %v3262_v8, %v3261_v22  ;;  %v3264_v28 = vpop.f32.mrb[10].mxu0 }
 0x191   : > { %v3265_v54 = vpop.f32.mrb[11].mxu0 }
 0x192   : > { %v5103_v38 = vadd.f32 %v3265_v54, %v3264_v28  ;;  %v4167_v54 = vld [vmem:[%s4619_s10 + $0xb4] sm:$0xff]  }
 0x193   : > { %2197 = vmatmul.mubr.bf16.gmra.mrb[116].mxu0 %v4163_v13  ;;  %3758 = vmatmul.mubr.bf16.gmra.mrb[84].mxu1 %v5027_v34 }
 0x194   : > { %2204 = vmatprep.mubr.bf16.mxu0 %v4956_v33  ;;  %3761 = vmatprep.mubr.bf16.mxu1 %v5038_v27 }
 0x196   : > { %v3267_v24 = vpop.f32.mrb[12].mxu0 }
 0x197   : > { %v3268_v41 = vpop.f32.mrb[13].mxu0 }
 0x198   : > { %v5109_v52 = vadd.f32 %v3268_v41, %v3267_v24  ;;  %v3270_v35 = vpop.f32.mrb[14].mxu0  ;;  %v777_v24 = vrot.slane %v775_v21, 1 }
 0x199   : > { %v3271_v18 = vpop.f32.mrb[15].mxu0 }
 0x19a   : > { %v5111_v29 = vadd.f32 %v3271_v18, %v3270_v35 }
 0x19b   : > { %2205 = vmatmul.mubr.bf16.gmra.mrb[120].mxu0 %v4164_v56  ;;  %3762 = vmatmul.mubr.bf16.gmra.mrb[88].mxu1 %v5041_v60 }
 0x19c   : > { %2212 = vmatprep.mubr.bf16.mxu0 %v4966_v23  ;;  %3765 = vmatprep.mubr.bf16.mxu1 %v5050_v30  ;;  %v4165_v23 = vld [vmem:[%s4619_s10 + $0x9c] sm:$0xff]  }
 0x19e   : > { %v3273_v16 = vpop.f32.mrb[16].mxu0  ;;  %v3385_v33 = vpop.f32.mrb[16].mxu1 }
 0x19f   : > { %v3274_v34 = vpop.f32.mrb[17].mxu0  ;;  %v3386_v20 = vpop.f32.mrb[17].mxu1 }
 0x1a0   : > { %v5117_v51 = vadd.f32 %v3274_v34, %v3273_v16  ;;  %v3276_v27 = vpop.f32.mrb[18].mxu0  ;;  %v5119_v9 = vadd.f32 %v3386_v20, %v3385_v33  ;;  %v3388_v26 = vpop.f32.mrb[18].mxu1 }
 0x1a1   : > { %v3277_v57 = vpop.f32.mrb[19].mxu0  ;;  %v3389_v4 = vpop.f32.mrb[19].mxu1 }
 0x1a2   : > { %v5121_v15 = vadd.f32 %v3277_v57, %v3276_v27  ;;  %v5123_v60 = vadd.f32 %v3389_v4, %v3388_v26  ;;  %v4168_v57 = vld [vmem:[%s4627_s7] sm:$0xff]   ;;  %v849_v4 = vrot.slane %v5134_v3, 1 }
 0x1a3   : > { %2213 = vmatmul.mubr.bf16.gmra.mrb[124].mxu0 %v4165_v23  ;;  %3766 = vmatmul.mubr.bf16.gmra.mrb[92].mxu1 %v4693_v40  ;;  %v850_v23 = vrot.slane %v4160_v36, 1 }
 0x1a4   : > { %2220 = vmatprep.mubr.bf16.mxu0 %v4976_v43  ;;  %3769 = vmatprep.mubr.bf16.mxu1 %v4704_v45  ;;  %v4166_v45 = vld [vmem:[%s4619_s10 + $0xa8] sm:$0xff]  }
 0x1a6   : > { %v3279_v31 = vpop.f32.mrb[20].mxu0  ;;  %v3391_v30 = vpop.f32.mrb[20].mxu1 }
 0x1a7   : > { %v3280_v2 = vpop.f32.mrb[21].mxu0  ;;  %v3392_v17 = vpop.f32.mrb[21].mxu1 }
 0x1a8   : > { %v5129_v48 = vadd.f32 %v3280_v2, %v3279_v31  ;;  %v3282_v10 = vpop.f32.mrb[22].mxu0  ;;  %v5131_v42 = vadd.f32 %v3392_v17, %v3391_v30  ;;  %v3394_v49 = vpop.f32.mrb[22].mxu1 }
 0x1a9   : > { %v3283_v47 = vpop.f32.mrb[23].mxu0  ;;  %v3395_v6 = vpop.f32.mrb[23].mxu1 }
 0x1aa   : > { %v5136_v40 = vadd.f32 %v3283_v47, %v3282_v10  ;;  %v5138_v43 = vadd.f32 %v3395_v6, %v3394_v49 }
 0x1ab   : > { %2221 = vmatmul.mubr.bf16.gmra.mrb[128].mxu0 %v4166_v45  ;;  %3770 = vmatmul.mubr.bf16.gmra.mrb[0].mxu1 %v4736_v63  ;;  %v768_v63 = vshrl.u32 %v5134_v3, 16 }
 0x1ac   : > { %2228 = vmatprep.mubr.bf16.mxu0 %v4986_v61  ;;  %3773 = vmatprep.mubr.bf16.mxu1 %v4746_v5  ;;  %v772_v61 = vrot.slane %v770_v39, 1  ;;  %v851_v39 = vsel %vm797_vm1, %v849_v4, %v850_v23 }
 0x1ae   : > { %v3285_v11 = vpop.f32.mrb[24].mxu0  ;;  %v3397_v44 = vpop.f32.mrb[24].mxu1  ;;  %v773_v13 = vor.u32 %v772_v61, %v768_v63 }
 0x1af   : > { %v3286_v62 = vpop.f32.mrb[25].mxu0  ;;  %v3398_v59 = vpop.f32.mrb[25].mxu1 }
 0x1b0   : > { %v5146_v50 = vadd.f32 %v3286_v62, %v3285_v11  ;;  %v3288_v1 = vpop.f32.mrb[26].mxu0  ;;  %v5148_v19 = vadd.f32 %v3398_v59, %v3397_v44  ;;  %v3400_v58 = vpop.f32.mrb[26].mxu1 }
 0x1b1   : > { %v3289_v22 = vpop.f32.mrb[27].mxu0  ;;  %v3401_v8 = vpop.f32.mrb[27].mxu1 }
 0x1b2   : > { %v5151_v5 = vadd.f32 %v3289_v22, %v3288_v1  ;;  %v5153_v28 = vadd.f32 %v3401_v8, %v3400_v58 }
 0x1b3   : > { %2229 = vmatmul.mubr.bf16.gmra.mrb[132].mxu0 %v4167_v54  ;;  %3774 = vmatmul.mubr.bf16.gmra.mrb[4].mxu1 %v4778_v32  ;;  %v778_v32 = vsel %vm562_vm0, %v773_v13, %v777_v24 }
 0x1b4   : > { %2236 = vmatprep.mubr.bf16.mxu0 %v4995_v53  ;;  %3777 = vmatprep.mubr.bf16.mxu1 %v4788_v37 }
 0x1b6   : > { %v3291_v41 = vpop.f32.mrb[28].mxu0  ;;  %v3403_v35 = vpop.f32.mrb[28].mxu1 }
 0x1b7   : > { %v3292_v18 = vpop.f32.mrb[29].mxu0  ;;  %v3404_v16 = vpop.f32.mrb[29].mxu1 }
 0x1b8   : > { %v5159_v56 = vadd.f32 %v3292_v18, %v3291_v41  ;;  %v3294_v33 = vpop.f32.mrb[30].mxu0  ;;  %v5161_v34 = vadd.f32 %v3404_v16, %v3403_v35  ;;  %v3406_v20 = vpop.f32.mrb[30].mxu1 }
 0x1b9   : > { %v3295_v27 = vpop.f32.mrb[31].mxu0  ;;  %v3407_v53 = vpop.f32.mrb[31].mxu1 }
 0x1ba   : > { %v5164_v26 = vadd.f32 %v3295_v27, %v3294_v33  ;;  %v5166_v37 = vadd.f32 %v3407_v53, %v3406_v20 }
 0x1bb   : > { %2237 = vmatmul.mubr.bf16.gmra.mrb[136].mxu0 %v4168_v57  ;;  %3778 = vmatmul.mubr.bf16.gmra.mrb[8].mxu1 %v4820_v0 }
 0x1bc   : > { %2244 = vmatprep.mubr.bf16.mxu0 %v778_v32  ;;  %3781 = vmatprep.mubr.bf16.mxu1 %v4830_v12 }
 0x1be   : > { %v3297_v31 = vpop.f32.mrb[32].mxu0  ;;  %v3409_v30 = vpop.f32.mrb[32].mxu1 }
 0x1bf   : > { %v3298_v2 = vpop.f32.mrb[33].mxu0  ;;  %v3410_v10 = vpop.f32.mrb[33].mxu1 }
 0x1c0   : > { %v3299_v17 = vadd.f32 %v3298_v2, %v3297_v31  ;;  %v3300_v49 = vpop.f32.mrb[34].mxu0  ;;  %v5172_v47 = vadd.f32 %v3410_v10, %v3409_v30  ;;  %v3412_v6 = vpop.f32.mrb[34].mxu1 }
 0x1c1   : > { %v3301_v45 = vpop.f32.mrb[35].mxu0  ;;  %v3413_v0 = vpop.f32.mrb[35].mxu1 }
 0x1c2   : > { %v3302_v11 = vadd.f32 %v3301_v45, %v3300_v49  ;;  %v5175_v44 = vadd.f32 %v3413_v0, %v3412_v6 }
 0x1c3   : > { %2245 = vmatmul.mubr.bf16.gmra.mrb[140].mxu0 %v5134_v3  ;;  %3782 = vmatmul.mubr.bf16.gmra.mrb[12].mxu1 %v851_v39 }
 0x1c6   : > { %v3303_v12 = vpop.f32.mrb[36].mxu0  ;;  %v3415_v36 = vpop.f32.mrb[36].mxu1 }
 0x1c7   : > { %v3304_v62 = vpop.f32.mrb[37].mxu0  ;;  %v3416_v1 = vpop.f32.mrb[37].mxu1 }
 0x1c8   : > { %v3305_v59 = vadd.f32 %v3304_v62, %v3303_v12  ;;  %v3306_v58 = vpop.f32.mrb[38].mxu0  ;;  %v5178_v22 = vadd.f32 %v3416_v1, %v3415_v36  ;;  %v3418_v63 = vpop.f32.mrb[38].mxu1 }
 0x1c9   : > { %v3307_v61 = vpop.f32.mrb[39].mxu0  ;;  %v3419_v8 = vpop.f32.mrb[39].mxu1 }
 0x1ca   : > { %v3308_v21 = vadd.f32 %v3307_v61, %v3306_v58  ;;  %v5180_v54 = vadd.f32 %v3419_v8, %v3418_v63 }
 0x1ce   : > { %v3309_v13 = vpop.f32.mrb[40].mxu0  ;;  %v3421_v24 = vpop.f32.mrb[40].mxu1 }
 0x1cf   : > { %v3310_v41 = vpop.f32.mrb[41].mxu0  ;;  %v3422_v3 = vpop.f32.mrb[41].mxu1 }
 0x1d0   : > { %v3311_v35 = vadd.f32 %v3310_v41, %v3309_v13  ;;  %v3312_v18 = vpop.f32.mrb[42].mxu0  ;;  %v5182_v16 = vadd.f32 %v3422_v3, %v3421_v24  ;;  %v3424_v33 = vpop.f32.mrb[42].mxu1 }
 0x1d1   : > { %v3313_v20 = vpop.f32.mrb[43].mxu0  ;;  %v3425_v32 = vpop.f32.mrb[43].mxu1 }
 0x1d2   : > { %v3314_v27 = vadd.f32 %v3313_v20, %v3312_v18  ;;  %v5184_v53 = vadd.f32 %v3425_v32, %v3424_v33 }
 0x1d6   : > { %v3315_v57 = vpop.f32.mrb[44].mxu0  ;;  %v3427_v4 = vpop.f32.mrb[44].mxu1 }
 0x1d7   : > { %v3316_v23 = vpop.f32.mrb[45].mxu0  ;;  %v3428_v30 = vpop.f32.mrb[45].mxu1 }
 0x1d8   : > { %v3317_v31 = vadd.f32 %v3316_v23, %v3315_v57  ;;  %v3318_v2 = vpop.f32.mrb[46].mxu0  ;;  %v5186_v10 = vadd.f32 %v3428_v30, %v3427_v4  ;;  %v3430_v49 = vpop.f32.mrb[46].mxu1 }
 0x1d9   : > { %v3319_v6 = vpop.f32.mrb[47].mxu0  ;;  %v3431_v39 = vpop.f32.mrb[47].mxu1 }
 0x1da   : > { %v3320_v45 = vadd.f32 %v3319_v6, %v3318_v2  ;;  %v5188_v0 = vadd.f32 %v3431_v39, %v3430_v49 }
 0x1de   : > { %v3321_v12 = vpop.f32.mrb[48].mxu0  ;;  %v3433_v36 = vpop.f32.mrb[48].mxu1 }
 0x1df   : > { %v3322_v62 = vpop.f32.mrb[49].mxu0  ;;  %v3434_v58 = vpop.f32.mrb[49].mxu1 }
 0x1e0   : > { %v5190_v1 = vadd.f32 %v3322_v62, %v3321_v12  ;;  %v3324_v63 = vpop.f32.mrb[50].mxu0  ;;  %v3435_v61 = vadd.f32 %v3434_v58, %v3433_v36  ;;  %v3436_v8 = vpop.f32.mrb[50].mxu1 }
 0x1e1   : > { %v3325_v13 = vpop.f32.mrb[51].mxu0  ;;  %v3437_v41 = vpop.f32.mrb[51].mxu1 }
 0x1e2   : > { %v5192_v24 = vadd.f32 %v3325_v13, %v3324_v63  ;;  %v5194_v3 = vadd.f32 %v3435_v61, %v3299_v17  ;;  %v3438_v18 = vadd.f32 %v3437_v41, %v3436_v8 }
 0x1e4   : > { %v5196_v33 = vadd.f32 %v3438_v18, %v3302_v11 }
 0x1e6   : > { %v3327_v20 = vpop.f32.mrb[52].mxu0  ;;  %v3439_v32 = vpop.f32.mrb[52].mxu1 }
 0x1e7   : > { %v3328_v57 = vpop.f32.mrb[53].mxu0  ;;  %v3440_v23 = vpop.f32.mrb[53].mxu1 }
 0x1e8   : > { %v5198_v4 = vadd.f32 %v3328_v57, %v3327_v20  ;;  %v3330_v30 = vpop.f32.mrb[54].mxu0  ;;  %v3441_v2 = vadd.f32 %v3440_v23, %v3439_v32  ;;  %v3442_v49 = vpop.f32.mrb[54].mxu1 }
 0x1e9   : > { %v3331_v6 = vpop.f32.mrb[55].mxu0  ;;  %v3443_v12 = vpop.f32.mrb[55].mxu1 }
 0x1ea   : > { %v5200_v39 = vadd.f32 %v3331_v6, %v3330_v30  ;;  %v5202_v36 = vadd.f32 %v3441_v2, %v3305_v59  ;;  %v3444_v17 = vadd.f32 %v3443_v12, %v3442_v49 }
 0x1ec   : > { %v5204_v62 = vadd.f32 %v3444_v17, %v3308_v21 }
 0x1ee   : > { %v3333_v11 = vpop.f32.mrb[56].mxu0  ;;  %v3445_v58 = vpop.f32.mrb[56].mxu1 }
 0x1ef   : > { %v3334_v63 = vpop.f32.mrb[57].mxu0  ;;  %v3446_v8 = vpop.f32.mrb[57].mxu1 }
 0x1f0   : > { %v5206_v61 = vadd.f32 %v3334_v63, %v3333_v11  ;;  %v3336_v13 = vpop.f32.mrb[58].mxu0  ;;  %v3447_v41 = vadd.f32 %v3446_v8, %v3445_v58  ;;  %v3448_v18 = vpop.f32.mrb[58].mxu1 }
 0x1f1   : > { %v3337_v20 = vpop.f32.mrb[59].mxu0  ;;  %v3449_v57 = vpop.f32.mrb[59].mxu1 }
 0x1f2   : > { %v5208_v32 = vadd.f32 %v3337_v20, %v3336_v13  ;;  %v5210_v23 = vadd.f32 %v3447_v41, %v3311_v35  ;;  %v3450_v59 = vadd.f32 %v3449_v57, %v3448_v18 }
 0x1f4   : > { %v5212_v30 = vadd.f32 %v3450_v59, %v3314_v27 }
 0x1f6   : > { %5582 = vst [vmem:[#allocation20_spill] sm:$0xff] %v5212_v30  ;;  %v3339_v21 = vpop.f32.mrb[60].mxu0  ;;  %v3451_v2 = vpop.f32.mrb[60].mxu1 }
 0x1f7   : > { %v3340_v49 = vpop.f32.mrb[61].mxu0  ;;  %v3452_v12 = vpop.f32.mrb[61].mxu1 }
 0x1f8   : > { %v5214_v6 = vadd.f32 %v3340_v49, %v3339_v21  ;;  %v3342_v17 = vpop.f32.mrb[62].mxu0  ;;  %v3453_v11 = vadd.f32 %v3452_v12, %v3451_v2  ;;  %v3454_v63 = vpop.f32.mrb[62].mxu1 }
 0x1f9   : > { %v3343_v58 = vpop.f32.mrb[63].mxu0  ;;  %v3455_v13 = vpop.f32.mrb[63].mxu1 }
 0x1fa   : > { %v5216_v8 = vadd.f32 %v3343_v58, %v3342_v17  ;;  %v5218_v20 = vadd.f32 %v3453_v11, %v3317_v31  ;;  %v3456_v35 = vadd.f32 %v3455_v13, %v3454_v63 }
 0x1fc   : > { %v5220_v41 = vadd.f32 %v3456_v35, %v3320_v45 }
 0x1fe   : > { %v3659_v27 = vpop.f32.mrb[64].mxu0  ;;  %v3457_v57 = vpop.f32.mrb[64].mxu1 }
 0x1ff   : > { %v1315_v18 = vadd.f32 %v3659_v27, %v5089_v55  ;;  %v1306_v59 = vpop.f32.mrb[65].mxu0  ;;  %v3458_v49 = vpop.f32.mrb[65].mxu1 }
 0x200   : > { %v1307_v21 = vadd.f32 %v5081_v14, %v1306_v59  ;;  %v3660_v30 = vpop.f32.mrb[66].mxu0  ;;  %v3459_v12 = vadd.f32 %v3458_v49, %v3457_v57  ;;  %v3460_v31 = vpop.f32.mrb[66].mxu1 }
 0x201   : > { %v5225_v2 = vadd.f32 %v5131_v42, %v1315_v18  ;;  %v1318_v17 = vadd.f32 %v3660_v30, %v5093_v25  ;;  %v1309_v11 = vpop.f32.mrb[67].mxu0  ;;  %v3461_v55 = vpop.f32.mrb[67].mxu1 }
 0x202   : > { %v5229_v45 = vadd.f32 %v5119_v9, %v1307_v21  ;;  %v1310_v63 = vadd.f32 %v5083_v46, %v1309_v11  ;;  %v5233_v58 = vadd.f32 %v3459_v12, %v5190_v1  ;;  %v3462_v13 = vadd.f32 %v3461_v55, %v3460_v31 }
 0x203   : > { %v5236_v14 = vadd.f32 %v5138_v43, %v1318_v17 }
 0x204   : > { %v5239_v42 = vadd.f32 %v5123_v60, %v1310_v63  ;;  %v5242_v25 = vadd.f32 %v3462_v13, %v5192_v24 }
 0x206   : > { %v3663_v30 = vpop.f32.mrb[68].mxu0  ;;  %v3463_v35 = vpop.f32.mrb[68].mxu1 }
 0x207   : > { %v1331_v9 = vadd.f32 %v3663_v30, %v5109_v52  ;;  %v1322_v27 = vpop.f32.mrb[69].mxu0  ;;  %v3464_v18 = vpop.f32.mrb[69].mxu1 }
 0x208   : > { %v1323_v46 = vadd.f32 %v5099_v7, %v1322_v27  ;;  %v3664_v1 = vpop.f32.mrb[70].mxu0  ;;  %v3465_v43 = vadd.f32 %v3464_v18, %v3463_v35  ;;  %v3466_v60 = vpop.f32.mrb[70].mxu1 }
 0x209   : > { %v5247_v57 = vadd.f32 %v5161_v34, %v1331_v9  ;;  %v1334_v59 = vadd.f32 %v3664_v1, %v5111_v29  ;;  %v1325_v21 = vpop.f32.mrb[71].mxu0  ;;  %v3467_v52 = vpop.f32.mrb[71].mxu1 }
 0x20a   : > { %v5251_v24 = vadd.f32 %v5148_v19, %v1323_v46  ;;  %v1326_v49 = vadd.f32 %v5103_v38, %v1325_v21  ;;  %v5255_v12 = vadd.f32 %v3465_v43, %v5198_v4  ;;  %v3468_v17 = vadd.f32 %v3467_v52, %v3466_v60 }
 0x20b   : > { %v5258_v7 = vadd.f32 %v5166_v37, %v1334_v59 }
 0x20c   : > { %v5261_v34 = vadd.f32 %v5153_v28, %v1326_v49  ;;  %v5264_v29 = vadd.f32 %v3468_v17, %v5200_v39 }
 0x20e   : > { %v3667_v31 = vpop.f32.mrb[72].mxu0  ;;  %v3469_v11 = vpop.f32.mrb[72].mxu1 }
 0x20f   : > { %v1347_v19 = vadd.f32 %v3667_v31, %v5129_v48  ;;  %v1338_v63 = vpop.f32.mrb[73].mxu0  ;;  %v3470_v55 = vpop.f32.mrb[73].mxu1 }
 0x210   : > { %v1339_v38 = vadd.f32 %v5117_v51, %v1338_v63  ;;  %v3668_v4 = vpop.f32.mrb[74].mxu0  ;;  %v3471_v37 = vadd.f32 %v3470_v55, %v3469_v11  ;;  %v3472_v28 = vpop.f32.mrb[74].mxu1 }
 0x211   : > { %v5269_v13 = vadd.f32 %v5178_v22, %v1347_v19  ;;  %v1350_v30 = vadd.f32 %v3668_v4, %v5136_v40  ;;  %v1341_v9 = vpop.f32.mrb[75].mxu0  ;;  %v3473_v48 = vpop.f32.mrb[75].mxu1 }
 0x212   : > { %v5273_v39 = vadd.f32 %v5172_v47, %v1339_v38  ;;  %v1342_v35 = vadd.f32 %v5121_v15, %v1341_v9  ;;  %v5277_v27 = vadd.f32 %v3471_v37, %v5206_v61  ;;  %v3474_v46 = vadd.f32 %v3473_v48, %v3472_v28 }
 0x213   : > { %v5280_v51 = vadd.f32 %v5180_v54, %v1350_v30 }
 0x214   : > { %v1647_v22 = vadd.f32 %v5175_v44, %v1342_v35  ;;  %v5284_v18 = vadd.f32 %v3474_v46, %v5208_v32 }
 0x216   : > { %v3671_v40 = vpop.f32.mrb[76].mxu0  ;;  %v3475_v47 = vpop.f32.mrb[76].mxu1 }
 0x217   : > { %v1363_v1 = vadd.f32 %v3671_v40, %v5159_v56  ;;  %v1354_v43 = vpop.f32.mrb[77].mxu0  ;;  %v3476_v59 = vpop.f32.mrb[77].mxu1 }
 0x218   : > { %v1355_v15 = vadd.f32 %v5146_v50, %v1354_v43  ;;  %v3672_v60 = vpop.f32.mrb[78].mxu0  ;;  %v3477_v54 = vadd.f32 %v3476_v59, %v3475_v47  ;;  %v3478_v49 = vpop.f32.mrb[78].mxu1 }
 0x219   : > { %v5289_v61 = vadd.f32 %v5186_v10, %v1363_v1  ;;  %v1366_v21 = vadd.f32 %v3672_v60, %v5164_v26  ;;  %v1357_v44 = vpop.f32.mrb[79].mxu0  ;;  %v3479_v17 = vpop.f32.mrb[79].mxu1 }
 0x21a   : > { %v1660_v32 = vadd.f32 %v5182_v16, %v1355_v15  ;;  %v1358_v52 = vadd.f32 %v5151_v5, %v1357_v44  ;;  %v5295_v56 = vadd.f32 %v3477_v54, %v5214_v6  ;;  %v3480_v31 = vadd.f32 %v3479_v17, %v3478_v49 }
 0x21b   : > { %v5298_v50 = vadd.f32 %v5188_v0, %v1366_v21 }
 0x21c   : > { %v1663_v10 = vadd.f32 %v5184_v53, %v1358_v52  ;;  %v5302_v19 = vadd.f32 %v3480_v31, %v5216_v8 }
 0x21e   : > { %v3521_v26 = vpop.f32.mrb[80].mxu0 }
 0x21f   : > { %v3522_v11 = vpop.f32.mrb[81].mxu0 }
 0x220   : > { %v3523_v63 = vadd.f32 %v3522_v11, %v3521_v26  ;;  %v3524_v38 = vpop.f32.mrb[82].mxu0 }
 0x221   : > { %v3525_v16 = vpop.f32.mrb[83].mxu0 }
 0x222   : > { %v3526_v55 = vadd.f32 %v3525_v16, %v3524_v38  ;;  %v5305_v5 = vadd.f32 %v3523_v63, %v5229_v45 }
 0x224   : > { %v5308_v6 = vadd.f32 %v3526_v55, %v5239_v42 }
 0x226   : > { %v3527_v0 = vpop.f32.mrb[84].mxu0 }
 0x227   : > { %v3528_v4 = vpop.f32.mrb[85].mxu0 }
 0x228   : > { %v3529_v37 = vadd.f32 %v3528_v4, %v3527_v0  ;;  %v3530_v30 = vpop.f32.mrb[86].mxu0 }
 0x229   : > { %v3531_v53 = vpop.f32.mrb[87].mxu0 }
 0x22a   : > { %v3532_v28 = vadd.f32 %v3531_v53, %v3530_v30  ;;  %v3803_v8 = vadd.f32 %v3529_v37, %v5225_v2 }
 0x22c   : > { %v3811_v9 = vadd.f32 %v3532_v28, %v5236_v14 }
 0x22e   : > { %v3533_v35 = vpop.f32.mrb[88].mxu0 }
 0x22f   : > { %v3534_v48 = vpop.f32.mrb[89].mxu0 }
 0x230   : > { %v3535_v46 = vadd.f32 %v3534_v48, %v3533_v35  ;;  %v3536_v40 = vpop.f32.mrb[90].mxu0 }
 0x231   : > { %v3537_v1 = vpop.f32.mrb[91].mxu0 }
 0x232   : > { %v3538_v45 = vadd.f32 %v3537_v1, %v3536_v40  ;;  %v5313_v47 = vadd.f32 %v3535_v46, %v5251_v24 }
 0x234   : > { %v5316_v42 = vadd.f32 %v3538_v45, %v5261_v34 }
 0x236   : > { %v3539_v43 = vpop.f32.mrb[92].mxu0 }
 0x237   : > { %v3540_v15 = vpop.f32.mrb[93].mxu0 }
 0x238   : > { %v3541_v59 = vadd.f32 %v3540_v15, %v3539_v43  ;;  %v3542_v60 = vpop.f32.mrb[94].mxu0 }
 0x239   : > { %v3543_v54 = vpop.f32.mrb[95].mxu0 }
 0x23a   : > { %v3544_v2 = vadd.f32 %v3543_v54, %v3542_v60  ;;  %v5319_v14 = vadd.f32 %v3541_v59, %v5247_v57 }
 0x23c   : > { %v5322_v21 = vadd.f32 %v3544_v2, %v5258_v7 }
 0x23e   : > { %v3545_v49 = vpop.f32.mrb[96].mxu0 }
 0x23f   : > { %v3546_v44 = vpop.f32.mrb[97].mxu0 }
 0x240   : > { %v3547_v52 = vadd.f32 %v3546_v44, %v3545_v49  ;;  %v3548_v24 = vpop.f32.mrb[98].mxu0 }
 0x241   : > { %v3549_v17 = vpop.f32.mrb[99].mxu0 }
 0x242   : > { %v3550_v31 = vadd.f32 %v3549_v17, %v3548_v24  ;;  %v5325_v34 = vadd.f32 %v3547_v52, %v5273_v39 }
 0x244   : > { %v5327_v26 = vadd.f32 %v3550_v31, %v1647_v22 }
 0x246   : > { %v3551_v11 = vpop.f32.mrb[100].mxu0 }
 0x247   : > { %v3552_v63 = vpop.f32.mrb[101].mxu0 }
 0x248   : > { %v3553_v38 = vadd.f32 %v3552_v63, %v3551_v11  ;;  %v3554_v16 = vpop.f32.mrb[102].mxu0 }
 0x249   : > { %v3555_v57 = vpop.f32.mrb[103].mxu0 }
 0x24a   : > { %v3556_v55 = vadd.f32 %v3555_v57, %v3554_v16  ;;  %v5330_v7 = vadd.f32 %v3553_v38, %v5269_v13 }
 0x24c   : > { %v5333_v0 = vadd.f32 %v3556_v55, %v5280_v51 }
 0x24e   : > { %v3557_v4 = vpop.f32.mrb[104].mxu0 }
 0x24f   : > { %v3558_v37 = vpop.f32.mrb[105].mxu0 }
 0x250   : > { %v3559_v30 = vadd.f32 %v3558_v37, %v3557_v4  ;;  %v3560_v53 = vpop.f32.mrb[106].mxu0 }
 0x251   : > { %v3561_v39 = vpop.f32.mrb[107].mxu0 }
 0x252   : > { %v3562_v28 = vadd.f32 %v3561_v39, %v3560_v53  ;;  %v5335_v22 = vadd.f32 %v3559_v30, %v1660_v32 }
 0x254   : > { %v5337_v35 = vadd.f32 %v3562_v28, %v1663_v10  ;;  %v5348_v10 = vld [vmem:[%s5545_s3] ss:$0 sm:$0xff] }
 0x256   : > { %v3563_v48 = vpop.f32.mrb[108].mxu0 }
 0x257   : > { %v3564_v46 = vpop.f32.mrb[109].mxu0 }
 0x258   : > { %v3565_v40 = vadd.f32 %v3564_v46, %v3563_v48  ;;  %v3566_v1 = vpop.f32.mrb[110].mxu0 }
 0x259   : > { %v3567_v13 = vpop.f32.mrb[111].mxu0 }
 0x25a   : > { %v3568_v45 = vadd.f32 %v3567_v13, %v3566_v1  ;;  %v5340_v51 = vadd.f32 %v3565_v40, %v5289_v61 }
 0x25c   : > { %v5343_v43 = vadd.f32 %v3568_v45, %v5298_v50 }
 0x25e   : > { %v3569_v15 = vpop.f32.mrb[112].mxu0  ;;  %v3755_v59 = vpop.f32.mrb[80].mxu1 }
 0x25f   : > { %v3570_v60 = vpop.f32.mrb[113].mxu0  ;;  %v3804_v32 = vadd.f32 %v3803_v8, %v3755_v59  ;;  %v2287_v2 = vpop.f32.mrb[81].mxu1 }
 0x260   : > { %v3571_v54 = vadd.f32 %v3570_v60, %v3569_v15  ;;  %v3572_v49 = vpop.f32.mrb[114].mxu0  ;;  %v3808_v44 = vadd.f32 %v5305_v5, %v2287_v2  ;;  %v3756_v52 = vpop.f32.mrb[82].mxu1 }
 0x261   : > { %v3573_v61 = vpop.f32.mrb[115].mxu0  ;;  %v3812_v24 = vadd.f32 %v3811_v9, %v3756_v52  ;;  %v2290_v17 = vpop.f32.mrb[83].mxu1  ;;  %v2455_v63 = vadd.f32 %v3804_v32, %v5348_v10 }
 0x262   : > { %v3574_v50 = vadd.f32 %v3573_v61, %v3572_v49  ;;  %v5353_v31 = vadd.f32 %v5194_v3, %v3571_v54  ;;  %v2453_v8 = vadd.f32 %v3808_v44, %v5348_v10  ;;  %v3816_v11 = vadd.f32 %v5308_v6, %v2290_v17 }
 0x263   : > { %v2456_v38 = vadd.f32 %v3812_v24, %v5348_v10  ;;  %v2684_v48 = vmul.f32 %v2455_v63, %v2455_v63 }
 0x264   : > { %v5360_v16 = vadd.f32 %v5196_v33, %v3574_v50  ;;  %v2454_v5 = vadd.f32 %v3816_v11, %v5348_v10  ;;  %v2682_v55 = vmul.f32 %v2453_v8, %v2453_v8 }
 0x265   : > { %v3146_v57 = vpack.c.bf16 %v2456_v38, %v2455_v63  ;;  %v2685_v15 = vmul.f32 %v2456_v38, %v2456_v38 }
 0x266   : > { %v3575_v9 = vpop.f32.mrb[116].mxu0  ;;  %v3141_v4 = vpack.c.bf16 %v2454_v5, %v2453_v8  ;;  %v2645_v37 = vadd.f32 %v2454_v5, %v2453_v8  ;;  %v2683_v3 = vmul.f32 %v2454_v5, %v2454_v5  ;;  %v3759_v30 = vpop.f32.mrb[84].mxu1 }
 0x267   : > { %v3576_v53 = vpop.f32.mrb[117].mxu0  ;;  %3218 = vst [vmem:[%s5363_s17 + $0x8] sm:$0xff] %v3146_v57   ;;  %v3820_v6 = vadd.f32 %v5319_v14, %v3759_v30  ;;  %v2303_v33 = vpop.f32.mrb[85].mxu1 }
 0x268   : > { %v3577_v39 = vadd.f32 %v3576_v53, %v3575_v9  ;;  %v3578_v28 = vpop.f32.mrb[118].mxu0  ;;  %3142 = vst [vmem:[%s5363_s17] sm:$0xff] %v3141_v4   ;;  %v2646_v46 = vadd.f32 %v2645_v37, %v2455_v63  ;;  %v2714_v40 = vadd.f32 %v2683_v3, %v2682_v55  ;;  %v3824_v1 = vadd.f32 %v5313_v47, %v2303_v33  ;;  %v3760_v13 = vpop.f32.mrb[86].mxu1 }
 0x269   : > { %v3579_v45 = vpop.f32.mrb[119].mxu0  ;;  %v3828_v59 = vadd.f32 %v5322_v21, %v3760_v13  ;;  %v2306_v32 = vpop.f32.mrb[87].mxu1  ;;  %v2459_v52 = vadd.f32 %v3820_v6, %v5348_v10 }
 0x26a   : > { %v3580_v60 = vadd.f32 %v3579_v45, %v3578_v28  ;;  %v5371_v54 = vadd.f32 %v5202_v36, %v3577_v39  ;;  %v2715_v14 = vadd.f32 %v2714_v40, %v2684_v48  ;;  %v2457_v2 = vadd.f32 %v3824_v1, %v5348_v10 }
 0x26b   : > { %v2647_v49 = vadd.f32 %v2646_v46, %v2456_v38  ;;  %v3832_v44 = vadd.f32 %v5316_v42, %v2306_v32  ;;  %v2460_v47 = vadd.f32 %v3828_v59, %v5348_v10  ;;  %v2688_v37 = vmul.f32 %v2459_v52, %v2459_v52  ;;  %v5583_v59 = vld [vmem:[#allocation20_spill] sm:$0xff] }
 0x26c   : > { %v5378_v61 = vadd.f32 %v5204_v62, %v3580_v60  ;;  %v2686_v24 = vmul.f32 %v2457_v2, %v2457_v2  ;;  %v2716_v50 = vadd.f32 %v2715_v14, %v2685_v15 }
 0x26d   : > { %v2648_v21 = vadd.f32 %v2647_v49, %v2457_v2  ;;  %v2458_v36 = vadd.f32 %v3832_v44, %v5348_v10  ;;  %v3156_v17 = vpack.c.bf16 %v2460_v47, %v2459_v52  ;;  %v2689_v33 = vmul.f32 %v2460_v47, %v2460_v47 }
 0x26e   : > { %v3581_v8 = vpop.f32.mrb[120].mxu0  ;;  %v2717_v11 = vadd.f32 %v2716_v50, %v2686_v24  ;;  %v3763_v5 = vpop.f32.mrb[88].mxu1 }
 0x26f   : > { %v3151_v63 = vpack.c.bf16 %v2458_v36, %v2457_v2  ;;  %v2649_v38 = vadd.f32 %v2648_v21, %v2458_v36  ;;  %v2687_v42 = vmul.f32 %v2458_v36, %v2458_v36  ;;  %v3582_v57 = vpop.f32.mrb[121].mxu0  ;;  %3220 = vst [vmem:[%s5363_s17 + $0x18] sm:$0xff] %v3156_v17   ;;  %v3836_v9 = vadd.f32 %v5330_v7, %v3763_v5  ;;  %v2319_v62 = vpop.f32.mrb[89].mxu1 }
 0x270   : > { %v3583_v55 = vadd.f32 %v3582_v57, %v3581_v8  ;;  %v3584_v4 = vpop.f32.mrb[122].mxu0  ;;  %v3840_v53 = vadd.f32 %v5325_v34, %v2319_v62  ;;  %v3764_v6 = vpop.f32.mrb[90].mxu1 }
 0x271   : > { %3219 = vst [vmem:[%s5363_s17 + $0x10] sm:$0xff] %v3151_v63   ;;  %v2650_v3 = vadd.f32 %v2649_v38, %v2459_v52  ;;  %v2718_v30 = vadd.f32 %v2717_v11, %v2687_v42  ;;  %v3585_v39 = vpop.f32.mrb[123].mxu0  ;;  %v3844_v28 = vadd.f32 %v5333_v0, %v3764_v6  ;;  %v2322_v46 = vpop.f32.mrb[91].mxu1  ;;  %v2463_v15 = vadd.f32 %v3836_v9, %v5348_v10 }
 0x272   : > { %v3586_v48 = vadd.f32 %v3585_v39, %v3584_v4  ;;  %v5387_v40 = vadd.f32 %v5210_v23, %v3583_v55  ;;  %v2461_v1 = vadd.f32 %v3840_v53, %v5348_v10  ;;  %v3848_v45 = vadd.f32 %v5327_v26, %v2322_v46 }
 0x273   : > { %v2719_v7 = vadd.f32 %v2718_v30, %v2688_v37  ;;  %v2651_v13 = vadd.f32 %v2650_v3, %v2460_v47  ;;  %v2464_v34 = vadd.f32 %v3844_v28, %v5348_v10  ;;  %v2692_v11 = vmul.f32 %v2463_v15, %v2463_v15 }
 0x274   : > { %v5394_v60 = vadd.f32 %v5583_v59, %v3586_v48  ;;  %v2690_v32 = vmul.f32 %v2461_v1, %v2461_v1  ;;  %v2462_v23 = vadd.f32 %v3848_v45, %v5348_v10 }
 0x275   : > { %v2652_v0 = vadd.f32 %v2651_v13, %v2461_v1  ;;  %v2720_v14 = vadd.f32 %v2719_v7, %v2689_v33  ;;  %v3166_v2 = vpack.c.bf16 %v2464_v34, %v2463_v15  ;;  %v2693_v9 = vmul.f32 %v2464_v34, %v2464_v34 }
 0x276   : > { %v3587_v49 = vpop.f32.mrb[124].mxu0  ;;  %v3161_v52 = vpack.c.bf16 %v2462_v23, %v2461_v1  ;;  %v2691_v26 = vmul.f32 %v2462_v23, %v2462_v23  ;;  %v3767_v21 = vpop.f32.mrb[92].mxu1 }
 0x277   : > { %v2721_v44 = vadd.f32 %v2720_v14, %v2690_v32  ;;  %v2653_v47 = vadd.f32 %v2652_v0, %v2462_v23  ;;  %v3588_v24 = vpop.f32.mrb[125].mxu0  ;;  %3222 = vst [vmem:[%s5363_s17 + $0x28] sm:$0xff] %v3166_v2   ;;  %v3852_v50 = vadd.f32 %v5340_v51, %v3767_v21  ;;  %v2335_v17 = vpop.f32.mrb[93].mxu1 }
 0x278   : > { %v3589_v36 = vadd.f32 %v3588_v24, %v3587_v49  ;;  %v3590_v8 = vpop.f32.mrb[126].mxu0  ;;  %3221 = vst [vmem:[%s5363_s17 + $0x20] sm:$0xff] %v3161_v52   ;;  %v3856_v42 = vadd.f32 %v5335_v22, %v2335_v17  ;;  %v3768_v5 = vpop.f32.mrb[94].mxu1 }
 0x279   : > { %v2654_v63 = vadd.f32 %v2653_v47, %v2463_v15  ;;  %v2722_v38 = vadd.f32 %v2721_v44, %v2691_v26  ;;  %v3591_v57 = vpop.f32.mrb[127].mxu0  ;;  %v3860_v55 = vadd.f32 %v5343_v43, %v3768_v5  ;;  %v2338_v4 = vpop.f32.mrb[95].mxu1  ;;  %v2467_v6 = vadd.f32 %v3852_v50, %v5348_v10 }
 0x27a   : > { %v3592_v62 = vadd.f32 %v3591_v57, %v3590_v8  ;;  %v3878_v37 = vadd.f32 %v5218_v20, %v3589_v36  ;;  %v2465_v51 = vadd.f32 %v3856_v42, %v5348_v10  ;;  %v3864_v53 = vadd.f32 %v5337_v35, %v2338_v4 }
 0x27b   : > { %v2723_v3 = vadd.f32 %v2722_v38, %v2692_v11  ;;  %v2655_v30 = vadd.f32 %v2654_v63, %v2464_v34  ;;  %v2468_v22 = vadd.f32 %v3860_v55, %v5348_v10  ;;  %v2696_v32 = vmul.f32 %v2467_v6, %v2467_v6 }
 0x27c   : > { %v3884_v39 = vadd.f32 %v5220_v41, %v3592_v62  ;;  %v2694_v28 = vmul.f32 %v2465_v51, %v2465_v51  ;;  %v2466_v48 = vadd.f32 %v3864_v53, %v5348_v10 }
 0x27d   : > { %v2656_v33 = vadd.f32 %v2655_v30, %v2465_v51  ;;  %v2724_v43 = vadd.f32 %v2723_v3, %v2693_v9  ;;  %v3176_v20 = vpack.c.bf16 %v2468_v22, %v2467_v6  ;;  %v2697_v52 = vmul.f32 %v2468_v22, %v2468_v22 }
 0x27e   : > { %v3593_v46 = vpop.f32.mrb[128].mxu0  ;;  %v3171_v1 = vpack.c.bf16 %v2466_v48, %v2465_v51  ;;  %v2695_v45 = vmul.f32 %v2466_v48, %v2466_v48  ;;  %v3771_v35 = vpop.f32.mrb[0].mxu1 }
 0x27f   : > { %v2725_v7 = vadd.f32 %v2724_v43, %v2694_v28  ;;  %v2657_v13 = vadd.f32 %v2656_v33, %v2466_v48  ;;  %v3594_v15 = vpop.f32.mrb[129].mxu0  ;;  %3224 = vst [vmem:[%s5363_s17 + $0x38] sm:$0xff] %v3176_v20   ;;  %v3867_v34 = vadd.f32 %v5371_v54, %v3771_v35  ;;  %v2351_v0 = vpop.f32.mrb[1].mxu1 }
 0x280   : > { %v3595_v59 = vadd.f32 %v3594_v15, %v3593_v46  ;;  %v3596_v41 = vpop.f32.mrb[130].mxu0  ;;  %3223 = vst [vmem:[%s5363_s17 + $0x30] sm:$0xff] %v3171_v1   ;;  %v3870_v2 = vadd.f32 %v5353_v31, %v2351_v0  ;;  %v3772_v49 = vpop.f32.mrb[2].mxu1 }
 0x281   : > { %v2658_v14 = vadd.f32 %v2657_v13, %v2467_v6  ;;  %v2726_v23 = vadd.f32 %v2725_v7, %v2695_v45  ;;  %v3597_v44 = vpop.f32.mrb[131].mxu0  ;;  %v3873_v47 = vadd.f32 %v5378_v61, %v3772_v49  ;;  %v2354_v21 = vpop.f32.mrb[3].mxu1  ;;  %v2471_v8 = vadd.f32 %v3867_v34, %v5348_v10 }
 0x282   : > { %v3598_v26 = vadd.f32 %v3597_v44, %v3596_v41  ;;  %v5415_v24 = vadd.f32 %v5233_v58, %v3595_v59  ;;  %v2469_v50 = vadd.f32 %v3870_v2, %v5348_v10  ;;  %v3876_v17 = vadd.f32 %v5360_v16, %v2354_v21 }
 0x283   : > { %v2727_v54 = vadd.f32 %v2726_v23, %v2696_v32  ;;  %v2659_v36 = vadd.f32 %v2658_v14, %v2468_v22  ;;  %v2472_v31 = vadd.f32 %v3873_v47, %v5348_v10  ;;  %v2700_v53 = vmul.f32 %v2471_v8, %v2471_v8 }
 0x284   : > { %v5422_v11 = vadd.f32 %v5242_v25, %v3598_v26  ;;  %v2698_v63 = vmul.f32 %v2469_v50, %v2469_v50  ;;  %v2470_v58 = vadd.f32 %v3876_v17, %v5348_v10 }
 0x285   : > { %v2660_v61 = vadd.f32 %v2659_v36, %v2469_v50  ;;  %v2728_v38 = vadd.f32 %v2727_v54, %v2697_v52  ;;  %v3186_v42 = vpack.c.bf16 %v2472_v31, %v2471_v8  ;;  %v2701_v48 = vmul.f32 %v2472_v31, %v2472_v31 }
 0x286   : > { %v3599_v5 = vpop.f32.mrb[132].mxu0  ;;  %v3181_v9 = vpack.c.bf16 %v2470_v58, %v2469_v50  ;;  %v2699_v16 = vmul.f32 %v2470_v58, %v2470_v58  ;;  %v3775_v62 = vpop.f32.mrb[4].mxu1 }
 0x287   : > { %v2729_v57 = vadd.f32 %v2728_v38, %v2698_v63  ;;  %v2661_v55 = vadd.f32 %v2660_v61, %v2470_v58  ;;  %v3600_v4 = vpop.f32.mrb[133].mxu0  ;;  %3226 = vst [vmem:[%s5363_s17 + $0x48] sm:$0xff] %v3186_v42   ;;  %v3879_v3 = vadd.f32 %v3878_v37, %v3775_v62  ;;  %v2367_v30 = vpop.f32.mrb[5].mxu1 }
 0x288   : > { %v3601_v51 = vadd.f32 %v3600_v4, %v3599_v5  ;;  %v3602_v25 = vpop.f32.mrb[134].mxu0  ;;  %3225 = vst [vmem:[%s5363_s17 + $0x40] sm:$0xff] %v3181_v9   ;;  %v3882_v33 = vadd.f32 %v5387_v40, %v2367_v30  ;;  %v3776_v28 = vpop.f32.mrb[6].mxu1 }
 0x289   : > { %v2662_v6 = vadd.f32 %v2661_v55, %v2471_v8  ;;  %v2730_v22 = vadd.f32 %v2729_v57, %v2699_v16  ;;  %v3603_v43 = vpop.f32.mrb[135].mxu0  ;;  %v3885_v20 = vadd.f32 %v3884_v39, %v3776_v28  ;;  %v2370_v7 = vpop.f32.mrb[7].mxu1  ;;  %v2475_v15 = vadd.f32 %v3879_v3, %v5348_v10 }
 0x28a   : > { %v3604_v46 = vadd.f32 %v3603_v43, %v3602_v25  ;;  %v3890_v1 = vadd.f32 %v5255_v12, %v3601_v51  ;;  %v2473_v37 = vadd.f32 %v3882_v33, %v5348_v10  ;;  %v3888_v35 = vadd.f32 %v5394_v60, %v2370_v7 }
 0x28b   : > { %v2731_v13 = vadd.f32 %v2730_v22, %v2700_v53  ;;  %v2663_v45 = vadd.f32 %v2662_v6, %v2472_v31  ;;  %v2476_v34 = vadd.f32 %v3885_v20, %v5348_v10 }
 0x28c   : > { %v3896_v40 = vadd.f32 %v5264_v29, %v3604_v46  ;;  %v2702_v0 = vmul.f32 %v2473_v37, %v2473_v37  ;;  %v2474_v41 = vadd.f32 %v3888_v35, %v5348_v10  ;;  %v2704_v29 = vmul.f32 %v2475_v15, %v2475_v15 }
 0x28d   : > { %v2664_v59 = vadd.f32 %v2663_v45, %v2473_v37  ;;  %v2732_v39 = vadd.f32 %v2731_v13, %v2701_v48  ;;  %v3196_v12 = vpack.c.bf16 %v2476_v34, %v2475_v15  ;;  %v2705_v31 = vmul.f32 %v2476_v34, %v2476_v34 }
 0x28e   : > { %v3605_v32 = vpop.f32.mrb[136].mxu0  ;;  %v3191_v23 = vpack.c.bf16 %v2474_v41, %v2473_v37  ;;  %v2703_v49 = vmul.f32 %v2474_v41, %v2474_v41  ;;  %v3779_v60 = vpop.f32.mrb[8].mxu1 }
 0x28f   : > { %v2733_v14 = vadd.f32 %v2732_v39, %v2702_v0  ;;  %v2665_v2 = vadd.f32 %v2664_v59, %v2474_v41  ;;  %v3606_v44 = vpop.f32.mrb[137].mxu0  ;;  %3228 = vst [vmem:[%s5363_s17 + $0x58] sm:$0xff] %v3196_v12   ;;  %v3891_v52 = vadd.f32 %v3890_v1, %v3779_v60  ;;  %v2383_v26 = vpop.f32.mrb[9].mxu1 }
 0x290   : > { %v3607_v47 = vadd.f32 %v3606_v44, %v3605_v32  ;;  %v3608_v21 = vpop.f32.mrb[138].mxu0  ;;  %3227 = vst [vmem:[%s5363_s17 + $0x50] sm:$0xff] %v3191_v23   ;;  %v3894_v36 = vadd.f32 %v5415_v24, %v2383_v26  ;;  %v3780_v17 = vpop.f32.mrb[10].mxu1 }
 0x291   : > { %v2666_v54 = vadd.f32 %v2665_v2, %v2475_v15  ;;  %v2734_v50 = vadd.f32 %v2733_v14, %v2703_v49  ;;  %v3609_v8 = vpop.f32.mrb[139].mxu0  ;;  %v3897_v61 = vadd.f32 %v3896_v40, %v3780_v17  ;;  %v2386_v38 = vpop.f32.mrb[11].mxu1  ;;  %v2479_v55 = vadd.f32 %v3891_v52, %v5348_v10 }
 0x292   : > { %v3610_v63 = vadd.f32 %v3609_v8, %v3608_v21  ;;  %v3905_v58 = vadd.f32 %v5277_v27, %v3607_v47  ;;  %v2477_v5 = vadd.f32 %v3894_v36, %v5348_v10  ;;  %v3900_v9 = vadd.f32 %v5422_v11, %v2386_v38 }
 0x293   : > { %v2735_v42 = vadd.f32 %v2734_v50, %v2704_v29  ;;  %v2667_v57 = vadd.f32 %v2666_v54, %v2476_v34  ;;  %v2480_v16 = vadd.f32 %v3897_v61, %v5348_v10  ;;  %v2708_v20 = vmul.f32 %v2479_v55, %v2479_v55 }
 0x294   : > { %v3911_v24 = vadd.f32 %v5284_v18, %v3610_v63  ;;  %v2706_v4 = vmul.f32 %v2477_v5, %v2477_v5  ;;  %v2478_v51 = vadd.f32 %v3900_v9, %v5348_v10 }
 0x295   : > { %v2668_v62 = vadd.f32 %v2667_v57, %v2477_v5  ;;  %v2736_v3 = vadd.f32 %v2735_v42, %v2705_v31  ;;  %v3206_v27 = vpack.c.bf16 %v2480_v16, %v2479_v55  ;;  %v2709_v37 = vmul.f32 %v2480_v16, %v2480_v16 }
 0x296   : > { %v3611_v30 = vpop.f32.mrb[140].mxu0  ;;  %v3201_v53 = vpack.c.bf16 %v2478_v51, %v2477_v5  ;;  %v2707_v22 = vmul.f32 %v2478_v51, %v2478_v51  ;;  %v3783_v11 = vpop.f32.mrb[12].mxu1 }
 0x297   : > { %v2737_v25 = vadd.f32 %v2736_v3, %v2706_v4  ;;  %v2669_v6 = vadd.f32 %v2668_v62, %v2478_v51  ;;  %v3612_v33 = vpop.f32.mrb[141].mxu0  ;;  %3230 = vst [vmem:[%s5363_s17 + $0x68] sm:$0xff] %v3206_v27   ;;  %v2399_v43 = vpop.f32.mrb[13].mxu1 }
 0x298   : > { %v3613_v28 = vadd.f32 %v3612_v33, %v3611_v30  ;;  %v3614_v48 = vpop.f32.mrb[142].mxu0  ;;  %3229 = vst [vmem:[%s5363_s17 + $0x60] sm:$0xff] %v3201_v53   ;;  %v3906_v7 = vadd.f32 %v3905_v58, %v2399_v43  ;;  %v3784_v1 = vpop.f32.mrb[14].mxu1 }
 0x299   : > { %v2670_v18 = vadd.f32 %v2669_v6, %v2479_v55  ;;  %v2738_v46 = vadd.f32 %v2737_v25, %v2707_v22  ;;  %v3615_v13 = vpop.f32.mrb[143].mxu0  ;;  %v2402_v15 = vpop.f32.mrb[15].mxu1 }
 0x29a   : > { %v3902_v45 = vadd.f32 %v5295_v56, %v3613_v28  ;;  %v3616_v35 = vadd.f32 %v3615_v13, %v3614_v48  ;;  %v2481_v40 = vadd.f32 %v3906_v7, %v5348_v10  ;;  %v3912_v0 = vadd.f32 %v3911_v24, %v2402_v15 }
 0x29b   : > { %v2739_v34 = vadd.f32 %v2738_v46, %v2708_v20  ;;  %v2671_v59 = vadd.f32 %v2670_v18, %v2480_v16 }
 0x29c   : > { %v3903_v39 = vadd.f32 %v3902_v45, %v3783_v11  ;;  %v3908_v41 = vadd.f32 %v5302_v19, %v3616_v35  ;;  %v2710_v32 = vmul.f32 %v2481_v40, %v2481_v40  ;;  %v2482_v23 = vadd.f32 %v3912_v0, %v5348_v10 }
 0x29d   : > { %v2672_v12 = vadd.f32 %v2671_v59, %v2481_v40  ;;  %v2740_v14 = vadd.f32 %v2739_v34, %v2709_v37 }
 0x29e   : > { %v2483_v2 = vadd.f32 %v3903_v39, %v5348_v10  ;;  %v3909_v56 = vadd.f32 %v3908_v41, %v3784_v1  ;;  %v3211_v60 = vpack.c.bf16 %v2482_v23, %v2481_v40  ;;  %v2711_v52 = vmul.f32 %v2482_v23, %v2482_v23 }
 0x29f   : > { %v2741_v49 = vadd.f32 %v2740_v14, %v2710_v32  ;;  %v2673_v44 = vadd.f32 %v2672_v12, %v2482_v23 }
 0x2a0   : > { %v2712_v47 = vmul.f32 %v2483_v2, %v2483_v2  ;;  %v2484_v26 = vadd.f32 %v3909_v56, %v5348_v10  ;;  %3231 = vst [vmem:[%s5363_s17 + $0x70] sm:$0xff] %v3211_v60  }
 0x2a1   : > { %v2674_v19 = vadd.f32 %v2673_v44, %v2483_v2  ;;  %v2742_v21 = vadd.f32 %v2741_v49, %v2711_v52 }
 0x2a2   : > { %v3216_v29 = vpack.c.bf16 %v2484_v26, %v2483_v2  ;;  %v2713_v54 = vmul.f32 %v2484_v26, %v2484_v26 }
 0x2a3   : > { %v2675_v50 = vadd.f32 %v2674_v19, %v2484_v26  ;;  %v2743_v36 = vadd.f32 %v2742_v21, %v2712_v47 }
 0x2a4   : > { %3232 = vst [vmem:[%s5363_s17 + $0x78] sm:$0xff] %v3216_v29  }
 0x2a5   : > { %v2676_v10 = vrot.slane %v2675_v50, 4  ;;  %v2744_v17 = vadd.f32 %v2743_v36, %v2713_v54 }
 0x2a6   : > { %4271 = shalt.err (!%p4268_p8)
}
 0x2a7   : > { %s4272_s16 = scalar_lea.hbm %s5459_s25, 2048  ;;  %s4276_s20 = scalar_lea.hbm %s5546_s4, 4096 }
 0x2a8   : > { %p4273_p12 = scmp.ne.s32.totalorder %s5459_s25, %s4272_s16  ;;  %p4277_p6 = scmp.lt.u32.totalorder %s5459_s25, %s5546_s4 }
 0x2a9   : > { %p4278_p11 = scmp.lt.u32.totalorder %s4276_s20, %s4272_s16  ;;  %p4280_p5 = scmp.lt.u32.totalorder %s4272_s16, %s5459_s25 }
 0x2aa   : > { %p4274_p13 = pnand %p4273_p12, %p4512_p10 }
 0x2ab   : > { %p4279_p0 = por %p4278_p11, %p4277_p6 }
 0x2ac   : > { %p4275_p3 = pneg %p4274_p13 }
 0x2ad   : > { %p4281_p9 = por %p4280_p5, %p4279_p0 }
 0x2af   : > { %p4282_p1 = pnand %p4281_p9, %p4275_p3 }
 0x2b1   : > { %4285 = shalt.err (!%p4282_p1)
}
 0x2b2   : > { %s4388_s24 = smov 64   ;;  %s4389_s26 = smov 4   ;;  %v2677_v8 = vadd.f32 %v2676_v10, %v2675_v50  ;;  %v2745_v31 = vrot.slane %v2744_v17, 4  ;;  %vm2751_vm2 = vcmask 1040384  }
 0x2b3   : > { %3974 = dma.vmem_to_hbm [thread:$0]  (%p4512_p10), %s5461_s14, 2048, %s5459_s25, %s2755_s2, %s4388_s24, %s4388_s24, %s4389_s26  }
 0x2b4   : > { %v2678_v61 = vrot.slane %v2677_v8, 2  ;;  %v2746_v63 = vadd.f32 %v2745_v31, %v2744_v17  ;;  %s2956_s15 = sshll.u32 %s4615_s27, 1  ;;  %s3102_s17 = sshll.u32 %s4372_s21, 5 }
 0x2b5   : > { %s339_s12 = scalar_lea.vmem [#allocation9], %s2956_s15  ;;  %s5493_s25 = scalar_lea.hbm %s5547_s5, %s3102_s17 }
 0x2b6   : > { %v2679_v38 = vadd.f32 %v2678_v61, %v2677_v8  ;;  %v2747_v58 = vrot.slane %v2746_v63, 2  ;;  %s2793_s9 = sshll.u32 %s339_s12, 4  ;;  %s2760_s2 = scalar_lea.sflag [#allocation10], %s4615_s27  ;;  %s5495_s9 = int_to_ptr.vmem [resolvable:$true] %s2793_s9 }
 0x2b7   : > { %s4286_s11 = scalar_lea.vmem %s5495_s9, 32  ;;  %s4390_s21 = smov [#allocation9]  }
 0x2b8   : > { %v2680_v42 = vrot.slane %v2679_v38, 1  ;;  %v2748_v5 = vadd.f32 %v2747_v58, %v2746_v63  ;;  %p4287_p2 = scmp.ne.s32.totalorder %s5495_s9, %s4286_s11  ;;  %s4290_s13 = sshll.u32 %s4390_s21, 4  ;;  %s4291_s13 = int_to_ptr.vmem [resolvable:$false] %s4290_s13 }
 0x2b9   : > { %s4292_s8 = scalar_lea.vmem %s4291_s13, 64  ;;  %p4293_p8 = scmp.lt.s32.totalorder %s5495_s9, %s4291_s13 }
 0x2ba   : > { %v2749_v57 = vrot.slane %v2748_v5, 1  ;;  %v2681_v9 = vadd.f32 %v2680_v42, %v2679_v38  ;;  %p4288_p7 = pnand %p4287_p2, %p4512_p10  ;;  %p4294_p12 = scmp.lt.s32.totalorder %s4292_s8, %s4286_s11 }
 0x2bc   : > { %v2750_v55 = vadd.f32 %v2749_v57, %v2748_v5  ;;  %p4289_p4 = pneg %p4288_p7  ;;  %p4295_p13 = por %p4294_p12, %p4293_p8 }
 0x2be   : > { %v2752_v16 = vsel %vm2751_vm2, %v2681_v9, %v2750_v55  ;;  %p4296_p3 = pnand %p4295_p13, %p4289_p4 }
 0x2bf   : > { %2753 = vst [vmem:[%s339_s12] sm:$0x3] %v2752_v16 }
 0x2c0   : > { %4299 = shalt.err (!%p4296_p3)
}
 0x2c1   : > { %s4300_s27 = scalar_lea.hbm %s5493_s25, 32  ;;  %s4304_s10 = scalar_lea.hbm %s5547_s5, 64 }
 0x2c2   : > { %p4301_p6 = scmp.ne.s32.totalorder %s5493_s25, %s4300_s27  ;;  %p4305_p5 = scmp.lt.u32.totalorder %s5493_s25, %s5547_s5 }
 0x2c3   : > { %p4306_p9 = scmp.lt.u32.totalorder %s4304_s10, %s4300_s27  ;;  %p4308_p2 = scmp.lt.u32.totalorder %s4300_s27, %s5493_s25 }
 0x2c4   : > { %p4302_p11 = pnand %p4301_p6, %p4512_p10 }
 0x2c5   : > { %p4307_p1 = por %p4306_p9, %p4305_p5 }
 0x2c6   : > { %p4303_p0 = pneg %p4302_p11 }
 0x2c7   : > { %p4309_p7 = por %p4308_p2, %p4307_p1 }
 0x2c9   : > { %p4310_p4 = pnand %p4309_p7, %p4303_p0 }
 0x2cb   : > { %4313 = shalt.err (!%p4310_p4)
}
 0x2cc   : > { %3975 = dma.vmem_to_hbm [thread:$0]  (%p4512_p10), %s5495_s9, 32, %s5493_s25, %s2760_s2  }
 0x2cd PF: > { %s5584_s28 = sld [smem:[#allocation17_spill]]  ;;  %s2805_s7 = sand.u32 1, %s4360_s18  }
 0x2ce   : > { %p5586_p12 = scmp.ge.s32.totalorder %s4380_s23, 2  ;;  %s2806_s24 = scalar_lea.sflag [#allocation4], %s2805_s7 }
 0x2d3   : > { %p5585_p8 = scmp.ne.s32.totalorder %s5584_s28, 0 }
 0x2d5   : > { %p3990_p13 = pnand %p5586_p12, %p5585_p8 }
 0x2d7   : > { %4351 = dma.done.wait (!%p3990_p13), %s2806_s24, 2048  }
 0x2d8   : > { %4353 = vsyncadd (!%p3990_p13), %s2806_s24, 4294965248  ;;  %s2815_s26 = scalar_lea.sflag [#allocation10], %s2805_s7 }
 0x2d9   : > { %4355 = dma.done.wait (!%p3990_p13), %s2815_s26, 32  }
 0x2da   : > { %4357 = vsyncadd (!%p3990_p13), %s2815_s26, 4294967264  ;;  %s28_s23 = sadd.s32 1, %s4380_s23   ;;  %s5587_s6 = sld [smem:[#allocation16_spill]] }
 0x2db   : > { %p25_p3 = scmp.ge.s32.totalorder %s28_s23, 4   ;;  %s5588_s20 = sld [smem:[#allocation19_spill]] }
 0x2dc   : > { %s5589_s15 = sld [smem:[#allocation18_spill]]  ;;  %s5590_s18 = smov %s4364_s19 }
 0x2dd   : > { %s5592_s21 = smov %s4376_s22  ;;  %27 = sbr.rel (!%p25_p3) target bundleno = 13 (0xd), region = 117 }
 0x2e0   : > { %s5591_s19 = smov %s5587_s6 }
 0x2e2   : > { %s5593_s22 = smov %s5589_s15 }
 0x2e4   :  { %2820 = vsyncpa [#allocation3], 1 }
 0x2e5   :  { %2822 = vsyncpa [#allocation3 + $0x1], 1 }
 0x2e6   :  { %2823 = vsyncpa [#allocation6], 1 }
 0x2e7   :  { %2825 = vsyncpa [#allocation6 + $0x1], 1 }
 0x2e8   :  { %2826 = vsyncpa [#allocation4], 1 }
 0x2e9   :  { %2828 = vsyncpa [#allocation4 + $0x1], 1 }
 0x2ea   :  { %2829 = vsyncpa [#allocation10], 1 }
 0x2eb   :  { %2831 = vsyncpa [#allocation10 + $0x1], 1 }

</bundles_post_ra>
